<compile_context>
chip_gen: v5e
topology: v5e:2x2
jax: 0.10.0
libtpu: 0.0.40
codegen_flags: <defaults>
</compile_context>

<pallas_src>
import jax
import jax.numpy as jnp
import numpy as np
from jax.experimental import pallas as pl
from jax.experimental.pallas import tpu as pltpu

NEG_SLOPE_ACT = 0.01   # nn.LeakyReLU() default (act3)
NEG_SLOPE_GAT = 0.2    # GATConv default negative_slope

_VMEM = pl.BlockSpec(memory_space=pltpu.MemorySpace.VMEM)


def _leaky(x, slope):
    return jnp.where(x > 0, x, slope * x)


# ------------------------------ fused forward kernel ------------------------------
def _sfgat_fused_kernel(x_poi_ref, t_ref, adj_ref, *refs):
    (poi1_w, poi1_b, poi2_w, poi2_b,
     g1_w, g1_as, g1_ad, g1_bb,
     g2_w, g2_as, g2_ad, g2_bb,
     g3_w, g3_as, g3_ad, g3_bb,
     l0_wi, l0_wg, l0_wo, l0_bi, l0_bg, l0_bo,
     l1_wi, l1_wg, l1_wo, l1_bi, l1_bg, l1_bo,
     l2_wi, l2_wg, l2_wo, l2_bi, l2_bg, l2_bo,
     t1_w, t1_b, t2_w, t2_b,
     lin1_wx, lin1_wt, lin1_b,
     lin2_w, lin2_b, lin3_w, lin3_b,
     o_ref) = refs

    f32 = jnp.float32

    def dense(x, w_ref, b_ref):
        return jnp.dot(x, w_ref[...], preferred_element_type=f32) + b_ref[...]

    # ------------------ POI branch: poi1 -> act3 -> poi2 -> act3 ------------------
    x = _leaky(dense(x_poi_ref[...], poi1_w, poi1_b), NEG_SLOPE_ACT)     # [N, 64]
    x = _leaky(dense(x, poi2_w, poi2_b), NEG_SLOPE_ACT)                   # [N, 64]

    # ------------------ 3 GAT layers; adjacency mask computed once ----------------
    # adj[i, j] == 1  iff  edge j -> i exists (self loops included).
    mask = adj_ref[...] > 0.0                                             # [N, N]

    def gat(h_in, w_ref, asrc_ref, adst_ref, bias_ref):
        h = jnp.dot(h_in, w_ref[...], preferred_element_type=f32)         # [N, D]
        a_dst = jnp.sum(h * adst_ref[...], axis=-1, keepdims=True)        # [N, 1]
        a_src_row = jax.lax.dot_general(                                   # [1, N]
            asrc_ref[...], h, (((1,), (1,)), ((), ())),
            preferred_element_type=f32)
        e = _leaky(a_dst + a_src_row, NEG_SLOPE_GAT)                       # e[i, j] for edge j -> i
        e = jnp.where(mask, e, -1e30)                                      # masked softmax (self loops
        e = e - jnp.max(e, axis=-1, keepdims=True)                         #  guarantee a valid entry)
        p = jnp.exp(e)
        alpha = p * pl.reciprocal(jnp.sum(p, axis=-1, keepdims=True), approx=True)
        out = jnp.dot(alpha, h, preferred_element_type=f32) + bias_ref[...]
        return _leaky(out, NEG_SLOPE_ACT)                                  # act3 after each GAT

    x = gat(x, g1_w, g1_as, g1_ad, g1_bb)                                  # [N, 128]
    x = gat(x, g2_w, g2_as, g2_ad, g2_bb)                                  # [N, 128]
    x = gat(x, g3_w, g3_as, g3_ad, g3_bb)                                  # [N, 64]

    # ------- LSTM: 3 stacked cells, seq_len == 1, h0 = c0 = 0 (specialized) -------
    # With zero initial state the W_hh matmuls vanish and f*c_prev == 0, so only the
    # i / g / o gates matter:  c = sigmoid(x@Wi+bi)*tanh(x@Wg+bg);  h = sigmoid(x@Wo+bo)*tanh(c)
    def lstm_layer(xin, wi, wg, wo, bi, bg, bo):
        i = jax.nn.sigmoid(dense(xin, wi, bi))
        g = jnp.tanh(dense(xin, wg, bg))
        o = jax.nn.sigmoid(dense(xin, wo, bo))
        return o * jnp.tanh(i * g)

    t = lstm_layer(t_ref[...], l0_wi, l0_wg, l0_wo, l0_bi, l0_bg, l0_bo)
    t = lstm_layer(t, l1_wi, l1_wg, l1_wo, l1_bi, l1_bg, l1_bo)
    t = lstm_layer(t, l2_wi, l2_wg, l2_wo, l2_bi, l2_bg, l2_bo)            # hn[2], [N, 64]

    t = _leaky(dense(t, t1_w, t1_b), NEG_SLOPE_ACT)
    t = _leaky(dense(t, t2_w, t2_b), NEG_SLOPE_ACT)

    # ---------- head: cat([x, t], 1) @ W1 computed as two split matmuls -----------
    y = (jnp.dot(x, lin1_wx[...], preferred_element_type=f32)
         + jnp.dot(t, lin1_wt[...], preferred_element_type=f32)
         + lin1_b[...])
    y = jnp.maximum(y, 0.0)                                                # act1 (ReLU)
    y = jnp.maximum(dense(y, lin2_w, lin2_b), 0.0)                         # act1 (ReLU)
    o_ref[...] = dense(y, lin3_w, lin3_b)                                  # [N, 4]


# ------------------------------- parameter handling --------------------------------
def init_params(key, input_length):
    ks = iter(jax.random.split(key, 64))

    def unif(shape, bound):
        return jax.random.uniform(next(ks), shape, jnp.float32, -bound, bound)

    def lin(din, dout):
        b = 1.0 / float(din) ** 0.5
        return unif((din, dout), b), unif((1, dout), b)

    def gat(din, dout):
        b = 1.0 / float(din) ** 0.5
        return dict(w=unif((din, dout), b),
                    a_src=unif((1, dout), b),
                    a_dst=unif((1, dout), b),
                    bias=jnp.zeros((1, dout), jnp.float32))

    def lstm_layer(din, hid):
        # PyTorch LSTM layer specialized for h0 = c0 = 0: only the input->hidden
        # weights of the i / g / o gates and the combined (b_ih + b_hh) biases can
        # ever influence the output, so only those are stored.
        b = 1.0 / float(hid) ** 0.5
        return dict(wi=unif((din, hid), b), wg=unif((din, hid), b), wo=unif((din, hid), b),
                    bi=unif((1, hid), b), bg=unif((1, hid), b), bo=unif((1, hid), b))

    lin1_w, lin1_b = lin(128, 64)
    return {
        "poi1": lin(13, 64), "poi2": lin(64, 64),
        "gat1": gat(64, 128), "gat2": gat(128, 128), "gat3": gat(128, 64),
        "lstm0": lstm_layer(input_length, 64),
        "lstm1": lstm_layer(64, 64),
        "lstm2": lstm_layer(64, 64),
        "time1": lin(64, 64), "time2": lin(64, 64),
        # linear1 acts on cat([x_gat, t]); split the [128, 64] weight so the fused
        # kernel never materializes the concatenation.
        "lin1_wx": lin1_w[:64, :], "lin1_wt": lin1_w[64:, :], "lin1_b": lin1_b,
        "linear2": lin(64, 64), "linear3": lin(64, 4),
    }


def _flatten_params(p):
    flat = [*p["poi1"], *p["poi2"]]
    for g in ("gat1", "gat2", "gat3"):
        d = p[g]
        flat += [d["w"], d["a_src"], d["a_dst"], d["bias"]]
    for l in ("lstm0", "lstm1", "lstm2"):
        d = p[l]
        flat += [d["wi"], d["wg"], d["wo"], d["bi"], d["bg"], d["bo"]]
    flat += [*p["time1"], *p["time2"]]
    flat += [p["lin1_wx"], p["lin1_wt"], p["lin1_b"]]
    flat += [*p["linear2"], *p["linear3"]]
    return flat


# ---------------------------------- full forward -----------------------------------
def sfgat_forward(params, x_all, adj):
    n = x_all.shape[0]
    x_poi = x_all[:, 3:16]        # only slices actually used by SFGAT_POI_LONG.forward
    t_in = x_all[:, 421:]         # single LSTM time step, [N, input_length]
    inputs = [x_poi, t_in, adj] + _flatten_params(params)
    return pl.pallas_call(
        _sfgat_fused_kernel,
        out_shape=jax.ShapeDtypeStruct((n, 4), jnp.float32),
        in_specs=[_VMEM] * len(inputs),
        out_specs=_VMEM,
    )(*inputs)


# ------------------------- pure-JAX reference (for checking) -----------------------
def sfgat_reference(params, x_all, adj):
    def leaky(x, s=NEG_SLOPE_ACT):
        return jnp.where(x > 0, x, s * x)

    x = x_all[:, 3:16]
    t = x_all[:, 421:]
    w, b = params["poi1"]; x = leaky(x @ w + b)
    w, b = params["poi2"]; x = leaky(x @ w + b)

    mask = adj > 0

    def gat(h_in, d):
        h = h_in @ d["w"]
        a_dst = jnp.sum(h * d["a_dst"], -1, keepdims=True)
        a_src = jnp.sum(h * d["a_src"], -1, keepdims=True)
        e = leaky(a_dst + a_src.T, NEG_SLOPE_GAT)
        e = jnp.where(mask, e, -jnp.inf)
        alpha = jax.nn.softmax(e, axis=-1)
        return leaky(alpha @ h + d["bias"])

    x = gat(x, params["gat1"])
    x = gat(x, params["gat2"])
    x = gat(x, params["gat3"])

    def lstm_layer(xin, d):
        i = jax.nn.sigmoid(xin @ d["wi"] + d["bi"])
        g = jnp.tanh(xin @ d["wg"] + d["bg"])
        o = jax.nn.sigmoid(xin @ d["wo"] + d["bo"])
        return o * jnp.tanh(i * g)

    for l in ("lstm0", "lstm1", "lstm2"):
        t = lstm_layer(t, params[l])
    w, b = params["time1"]; t = leaky(t @ w + b)
    w, b = params["time2"]; t = leaky(t @ w + b)

    y = jnp.maximum(x @ params["lin1_wx"] + t @ params["lin1_wt"] + params["lin1_b"], 0.0)
    w, b = params["linear2"]; y = jnp.maximum(y @ w + b, 0.0)
    w, b = params["linear3"]
    return y @ w + b


if __name__ == "__main__":
    INPUT_LENGTH = 12
    N = 8  # number of graph nodes

    key = jax.random.PRNGKey(0)
    k_param, k_x = jax.random.split(key)

    params = init_params(k_param, INPUT_LENGTH)
    x_all = jax.random.normal(k_x, (N, 421 + INPUT_LENGTH), jnp.float32)

    # deterministic ring graph, both directions
    src = jnp.arange(N)
    dst = (src + 1) % N
    edge_index = jnp.stack([jnp.concatenate([src, dst]),
                            jnp.concatenate([dst, src])])            # [2, 2N]

    # dense adjacency: adj[i, j] = 1 iff edge j -> i (plus self loops, as GATConv does)
    adj = jnp.zeros((N, N), jnp.float32)
    adj = adj.at[edge_index[1], edge_index[0]].set(1.0)
    adj = adj.at[jnp.arange(N), jnp.arange(N)].set(1.0)

    fwd = jax.jit(sfgat_forward)
    out = jax.block_until_ready(fwd(params, x_all, adj))
    assert out.shape == (N, 4) and out.dtype == jnp.float32

    ref = jax.block_until_ready(jax.jit(sfgat_reference)(params, x_all, adj))
    np.testing.assert_allclose(np.asarray(out), np.asarray(ref), rtol=5e-2, atol=5e-2)

    print("KERNEL_OK")
</pallas_src>

<mosaic_0001>
module attributes {stable_mosaic.version = 11 : i64} {
  func.func @_sfgat_fused_kernel(%arg0: memref<8x13xf32, #tpu.memory_space<vmem>>, %arg1: memref<8x12xf32, #tpu.memory_space<vmem>>, %arg2: memref<8x8xf32, #tpu.memory_space<vmem>>, %arg3: memref<13x64xf32, #tpu.memory_space<vmem>>, %arg4: memref<1x64xf32, #tpu.memory_space<vmem>>, %arg5: memref<64x64xf32, #tpu.memory_space<vmem>>, %arg6: memref<1x64xf32, #tpu.memory_space<vmem>>, %arg7: memref<64x128xf32, #tpu.memory_space<vmem>>, %arg8: memref<1x128xf32, #tpu.memory_space<vmem>>, %arg9: memref<1x128xf32, #tpu.memory_space<vmem>>, %arg10: memref<1x128xf32, #tpu.memory_space<vmem>>, %arg11: memref<128x128xf32, #tpu.memory_space<vmem>>, %arg12: memref<1x128xf32, #tpu.memory_space<vmem>>, %arg13: memref<1x128xf32, #tpu.memory_space<vmem>>, %arg14: memref<1x128xf32, #tpu.memory_space<vmem>>, %arg15: memref<128x64xf32, #tpu.memory_space<vmem>>, %arg16: memref<1x64xf32, #tpu.memory_space<vmem>>, %arg17: memref<1x64xf32, #tpu.memory_space<vmem>>, %arg18: memref<1x64xf32, #tpu.memory_space<vmem>>, %arg19: memref<12x64xf32, #tpu.memory_space<vmem>>, %arg20: memref<12x64xf32, #tpu.memory_space<vmem>>, %arg21: memref<12x64xf32, #tpu.memory_space<vmem>>, %arg22: memref<1x64xf32, #tpu.memory_space<vmem>>, %arg23: memref<1x64xf32, #tpu.memory_space<vmem>>, %arg24: memref<1x64xf32, #tpu.memory_space<vmem>>, %arg25: memref<64x64xf32, #tpu.memory_space<vmem>>, %arg26: memref<64x64xf32, #tpu.memory_space<vmem>>, %arg27: memref<64x64xf32, #tpu.memory_space<vmem>>, %arg28: memref<1x64xf32, #tpu.memory_space<vmem>>, %arg29: memref<1x64xf32, #tpu.memory_space<vmem>>, %arg30: memref<1x64xf32, #tpu.memory_space<vmem>>, %arg31: memref<64x64xf32, #tpu.memory_space<vmem>>, %arg32: memref<64x64xf32, #tpu.memory_space<vmem>>, %arg33: memref<64x64xf32, #tpu.memory_space<vmem>>, %arg34: memref<1x64xf32, #tpu.memory_space<vmem>>, %arg35: memref<1x64xf32, #tpu.memory_space<vmem>>, %arg36: memref<1x64xf32, #tpu.memory_space<vmem>>, %arg37: memref<64x64xf32, #tpu.memory_space<vmem>>, %arg38: memref<1x64xf32, #tpu.memory_space<vmem>>, %arg39: memref<64x64xf32, #tpu.memory_space<vmem>>, %arg40: memref<1x64xf32, #tpu.memory_space<vmem>>, %arg41: memref<64x64xf32, #tpu.memory_space<vmem>>, %arg42: memref<64x64xf32, #tpu.memory_space<vmem>>, %arg43: memref<1x64xf32, #tpu.memory_space<vmem>>, %arg44: memref<64x64xf32, #tpu.memory_space<vmem>>, %arg45: memref<1x64xf32, #tpu.memory_space<vmem>>, %arg46: memref<64x4xf32, #tpu.memory_space<vmem>>, %arg47: memref<1x4xf32, #tpu.memory_space<vmem>>, %arg48: memref<8x4xf32, #tpu.memory_space<vmem>>) attributes {dimension_semantics = [], scalar_prefetch = 0 : i64, scratch_operands = 0 : i64, tpu.core_type = #tpu.core_type<tc>} {
    %c0 = arith.constant 0 : index
    %c0_0 = arith.constant 0 : index
    %0 = vector.load %arg0[%c0, %c0_0] : memref<8x13xf32, #tpu.memory_space<vmem>>, vector<8x13xf32>
    %c0_1 = arith.constant 0 : index
    %c0_2 = arith.constant 0 : index
    %1 = vector.load %arg3[%c0_1, %c0_2] : memref<13x64xf32, #tpu.memory_space<vmem>>, vector<13x64xf32>
    %cst = arith.constant dense<0.000000e+00> : vector<8x64xf32>
    %2 = tpu.matmul %0, %1, %cst {dimension_numbers = #tpu.dot_dimension_numbers<[1], [0], [0], [1], [0, 0, 1, 1], [], []>} : vector<8x13xf32>, vector<13x64xf32>, vector<8x64xf32> -> vector<8x64xf32>
    %c0_3 = arith.constant 0 : index
    %c0_4 = arith.constant 0 : index
    %3 = vector.load %arg4[%c0_3, %c0_4] : memref<1x64xf32, #tpu.memory_space<vmem>>, vector<1x64xf32>
    %4 = vector.broadcast %3 : vector<1x64xf32> to vector<8x64xf32>
    %5 = arith.addf %2, %4 : vector<8x64xf32>
    %cst_5 = arith.constant 0.000000e+00 : f32
    %6 = vector.broadcast %cst_5 : f32 to vector<8x64xf32>
    %7 = arith.cmpf ogt, %5, %6 : vector<8x64xf32>
    %cst_6 = arith.constant 0.00999999977 : f32
    %8 = vector.broadcast %cst_6 : f32 to vector<8x64xf32>
    %9 = arith.mulf %8, %5 : vector<8x64xf32>
    %10 = arith.select %7, %5, %9 : vector<8x64xi1>, vector<8x64xf32>
    %c0_7 = arith.constant 0 : index
    %c0_8 = arith.constant 0 : index
    %11 = vector.load %arg5[%c0_7, %c0_8] : memref<64x64xf32, #tpu.memory_space<vmem>>, vector<64x64xf32>
    %cst_9 = arith.constant dense<0.000000e+00> : vector<8x64xf32>
    %12 = tpu.matmul %10, %11, %cst_9 {dimension_numbers = #tpu.dot_dimension_numbers<[1], [0], [0], [1], [0, 0, 1, 1], [], []>} : vector<8x64xf32>, vector<64x64xf32>, vector<8x64xf32> -> vector<8x64xf32>
    %c0_10 = arith.constant 0 : index
    %c0_11 = arith.constant 0 : index
    %13 = vector.load %arg6[%c0_10, %c0_11] : memref<1x64xf32, #tpu.memory_space<vmem>>, vector<1x64xf32>
    %14 = vector.broadcast %13 : vector<1x64xf32> to vector<8x64xf32>
    %15 = arith.addf %12, %14 : vector<8x64xf32>
    %cst_12 = arith.constant 0.000000e+00 : f32
    %16 = vector.broadcast %cst_12 : f32 to vector<8x64xf32>
    %17 = arith.cmpf ogt, %15, %16 : vector<8x64xf32>
    %cst_13 = arith.constant 0.00999999977 : f32
    %18 = vector.broadcast %cst_13 : f32 to vector<8x64xf32>
    %19 = arith.mulf %18, %15 : vector<8x64xf32>
    %20 = arith.select %17, %15, %19 : vector<8x64xi1>, vector<8x64xf32>
    %c0_14 = arith.constant 0 : index
    %c0_15 = arith.constant 0 : index
    %21 = vector.load %arg2[%c0_14, %c0_15] : memref<8x8xf32, #tpu.memory_space<vmem>>, vector<8x8xf32>
    %cst_16 = arith.constant 0.000000e+00 : f32
    %22 = vector.broadcast %cst_16 : f32 to vector<8x8xf32>
    %23 = arith.cmpf ogt, %21, %22 : vector<8x8xf32>
    %c0_17 = arith.constant 0 : index
    %c0_18 = arith.constant 0 : index
    %24 = vector.load %arg7[%c0_17, %c0_18] : memref<64x128xf32, #tpu.memory_space<vmem>>, vector<64x128xf32>
    %cst_19 = arith.constant dense<0.000000e+00> : vector<8x128xf32>
    %25 = tpu.matmul %20, %24, %cst_19 {dimension_numbers = #tpu.dot_dimension_numbers<[1], [0], [0], [1], [0, 0, 1, 1], [], []>} : vector<8x64xf32>, vector<64x128xf32>, vector<8x128xf32> -> vector<8x128xf32>
    %c0_20 = arith.constant 0 : index
    %c0_21 = arith.constant 0 : index
    %26 = vector.load %arg9[%c0_20, %c0_21] : memref<1x128xf32, #tpu.memory_space<vmem>>, vector<1x128xf32>
    %27 = vector.broadcast %26 : vector<1x128xf32> to vector<8x128xf32>
    %28 = arith.mulf %25, %27 : vector<8x128xf32>
    %cst_22 = arith.constant dense<0.000000e+00> : vector<8xf32>
    %29 = vector.multi_reduction <add>, %28, %cst_22 [1] : vector<8x128xf32> to vector<8xf32>
    %30 = vector.shape_cast %29 : vector<8xf32> to vector<8x1xf32>
    %c0_23 = arith.constant 0 : index
    %c0_24 = arith.constant 0 : index
    %31 = vector.load %arg8[%c0_23, %c0_24] : memref<1x128xf32, #tpu.memory_space<vmem>>, vector<1x128xf32>
    %cst_25 = arith.constant dense<0.000000e+00> : vector<1x8xf32>
    %32 = tpu.matmul %31, %25, %cst_25 {dimension_numbers = #tpu.dot_dimension_numbers<[1], [1], [0], [0], [0, 0, 1, 0], [], []>} : vector<1x128xf32>, vector<8x128xf32>, vector<1x8xf32> -> vector<1x8xf32>
    %33 = vector.broadcast %30 : vector<8x1xf32> to vector<8x8xf32>
    %34 = vector.broadcast %32 : vector<1x8xf32> to vector<8x8xf32>
    %35 = arith.addf %33, %34 : vector<8x8xf32>
    %cst_26 = arith.constant 0.000000e+00 : f32
    %36 = vector.broadcast %cst_26 : f32 to vector<8x8xf32>
    %37 = arith.cmpf ogt, %35, %36 : vector<8x8xf32>
    %cst_27 = arith.constant 2.000000e-01 : f32
    %38 = vector.broadcast %cst_27 : f32 to vector<8x8xf32>
    %39 = arith.mulf %38, %35 : vector<8x8xf32>
    %40 = arith.select %37, %35, %39 : vector<8x8xi1>, vector<8x8xf32>
    %cst_28 = arith.constant -1.000000e+30 : f32
    %41 = vector.broadcast %cst_28 : f32 to vector<8x8xf32>
    %42 = arith.select %23, %40, %41 : vector<8x8xi1>, vector<8x8xf32>
    %cst_29 = arith.constant dense<0xFF800000> : vector<8xf32>
    %43 = vector.multi_reduction <maximumf>, %42, %cst_29 [1] : vector<8x8xf32> to vector<8xf32>
    %44 = vector.shape_cast %43 : vector<8xf32> to vector<8x1xf32>
    %45 = vector.broadcast %44 : vector<8x1xf32> to vector<8x8xf32>
    %46 = arith.subf %42, %45 : vector<8x8xf32>
    %47 = math.exp %46 : vector<8x8xf32>
    %cst_30 = arith.constant dense<0.000000e+00> : vector<8xf32>
    %48 = vector.multi_reduction <add>, %47, %cst_30 [1] : vector<8x8xf32> to vector<8xf32>
    %49 = vector.shape_cast %48 : vector<8xf32> to vector<8x1xf32>
    %50 = tpu.reciprocal %49 {approx = true} : vector<8x1xf32> -> vector<8x1xf32>
    %51 = vector.broadcast %50 : vector<8x1xf32> to vector<8x8xf32>
    %52 = arith.mulf %47, %51 : vector<8x8xf32>
    %cst_31 = arith.constant dense<0.000000e+00> : vector<8x128xf32>
    %53 = tpu.matmul %52, %25, %cst_31 {dimension_numbers = #tpu.dot_dimension_numbers<[1], [0], [0], [1], [0, 0, 1, 1], [], []>} : vector<8x8xf32>, vector<8x128xf32>, vector<8x128xf32> -> vector<8x128xf32>
    %c0_32 = arith.constant 0 : index
    %c0_33 = arith.constant 0 : index
    %54 = vector.load %arg10[%c0_32, %c0_33] : memref<1x128xf32, #tpu.memory_space<vmem>>, vector<1x128xf32>
    %55 = vector.broadcast %54 : vector<1x128xf32> to vector<8x128xf32>
    %56 = arith.addf %53, %55 : vector<8x128xf32>
    %cst_34 = arith.constant 0.000000e+00 : f32
    %57 = vector.broadcast %cst_34 : f32 to vector<8x128xf32>
    %58 = arith.cmpf ogt, %56, %57 : vector<8x128xf32>
    %cst_35 = arith.constant 0.00999999977 : f32
    %59 = vector.broadcast %cst_35 : f32 to vector<8x128xf32>
    %60 = arith.mulf %59, %56 : vector<8x128xf32>
    %61 = arith.select %58, %56, %60 : vector<8x128xi1>, vector<8x128xf32>
    %c0_36 = arith.constant 0 : index
    %c0_37 = arith.constant 0 : index
    %62 = vector.load %arg11[%c0_36, %c0_37] : memref<128x128xf32, #tpu.memory_space<vmem>>, vector<128x128xf32>
    %cst_38 = arith.constant dense<0.000000e+00> : vector<8x128xf32>
    %63 = tpu.matmul %61, %62, %cst_38 {dimension_numbers = #tpu.dot_dimension_numbers<[1], [0], [0], [1], [0, 0, 1, 1], [], []>} : vector<8x128xf32>, vector<128x128xf32>, vector<8x128xf32> -> vector<8x128xf32>
    %c0_39 = arith.constant 0 : index
    %c0_40 = arith.constant 0 : index
    %64 = vector.load %arg13[%c0_39, %c0_40] : memref<1x128xf32, #tpu.memory_space<vmem>>, vector<1x128xf32>
    %65 = vector.broadcast %64 : vector<1x128xf32> to vector<8x128xf32>
    %66 = arith.mulf %63, %65 : vector<8x128xf32>
    %cst_41 = arith.constant dense<0.000000e+00> : vector<8xf32>
    %67 = vector.multi_reduction <add>, %66, %cst_41 [1] : vector<8x128xf32> to vector<8xf32>
    %68 = vector.shape_cast %67 : vector<8xf32> to vector<8x1xf32>
    %c0_42 = arith.constant 0 : index
    %c0_43 = arith.constant 0 : index
    %69 = vector.load %arg12[%c0_42, %c0_43] : memref<1x128xf32, #tpu.memory_space<vmem>>, vector<1x128xf32>
    %cst_44 = arith.constant dense<0.000000e+00> : vector<1x8xf32>
    %70 = tpu.matmul %69, %63, %cst_44 {dimension_numbers = #tpu.dot_dimension_numbers<[1], [1], [0], [0], [0, 0, 1, 0], [], []>} : vector<1x128xf32>, vector<8x128xf32>, vector<1x8xf32> -> vector<1x8xf32>
    %71 = vector.broadcast %68 : vector<8x1xf32> to vector<8x8xf32>
    %72 = vector.broadcast %70 : vector<1x8xf32> to vector<8x8xf32>
    %73 = arith.addf %71, %72 : vector<8x8xf32>
    %cst_45 = arith.constant 0.000000e+00 : f32
    %74 = vector.broadcast %cst_45 : f32 to vector<8x8xf32>
    %75 = arith.cmpf ogt, %73, %74 : vector<8x8xf32>
    %cst_46 = arith.constant 2.000000e-01 : f32
    %76 = vector.broadcast %cst_46 : f32 to vector<8x8xf32>
    %77 = arith.mulf %76, %73 : vector<8x8xf32>
    %78 = arith.select %75, %73, %77 : vector<8x8xi1>, vector<8x8xf32>
    %cst_47 = arith.constant -1.000000e+30 : f32
    %79 = vector.broadcast %cst_47 : f32 to vector<8x8xf32>
    %80 = arith.select %23, %78, %79 : vector<8x8xi1>, vector<8x8xf32>
    %cst_48 = arith.constant dense<0xFF800000> : vector<8xf32>
    %81 = vector.multi_reduction <maximumf>, %80, %cst_48 [1] : vector<8x8xf32> to vector<8xf32>
    %82 = vector.shape_cast %81 : vector<8xf32> to vector<8x1xf32>
    %83 = vector.broadcast %82 : vector<8x1xf32> to vector<8x8xf32>
    %84 = arith.subf %80, %83 : vector<8x8xf32>
    %85 = math.exp %84 : vector<8x8xf32>
    %cst_49 = arith.constant dense<0.000000e+00> : vector<8xf32>
    %86 = vector.multi_reduction <add>, %85, %cst_49 [1] : vector<8x8xf32> to vector<8xf32>
    %87 = vector.shape_cast %86 : vector<8xf32> to vector<8x1xf32>
    %88 = tpu.reciprocal %87 {approx = true} : vector<8x1xf32> -> vector<8x1xf32>
    %89 = vector.broadcast %88 : vector<8x1xf32> to vector<8x8xf32>
    %90 = arith.mulf %85, %89 : vector<8x8xf32>
    %cst_50 = arith.constant dense<0.000000e+00> : vector<8x128xf32>
    %91 = tpu.matmul %90, %63, %cst_50 {dimension_numbers = #tpu.dot_dimension_numbers<[1], [0], [0], [1], [0, 0, 1, 1], [], []>} : vector<8x8xf32>, vector<8x128xf32>, vector<8x128xf32> -> vector<8x128xf32>
    %c0_51 = arith.constant 0 : index
    %c0_52 = arith.constant 0 : index
    %92 = vector.load %arg14[%c0_51, %c0_52] : memref<1x128xf32, #tpu.memory_space<vmem>>, vector<1x128xf32>
    %93 = vector.broadcast %92 : vector<1x128xf32> to vector<8x128xf32>
    %94 = arith.addf %91, %93 : vector<8x128xf32>
    %cst_53 = arith.constant 0.000000e+00 : f32
    %95 = vector.broadcast %cst_53 : f32 to vector<8x128xf32>
    %96 = arith.cmpf ogt, %94, %95 : vector<8x128xf32>
    %cst_54 = arith.constant 0.00999999977 : f32
    %97 = vector.broadcast %cst_54 : f32 to vector<8x128xf32>
    %98 = arith.mulf %97, %94 : vector<8x128xf32>
    %99 = arith.select %96, %94, %98 : vector<8x128xi1>, vector<8x128xf32>
    %c0_55 = arith.constant 0 : index
    %c0_56 = arith.constant 0 : index
    %100 = vector.load %arg15[%c0_55, %c0_56] : memref<128x64xf32, #tpu.memory_space<vmem>>, vector<128x64xf32>
    %cst_57 = arith.constant dense<0.000000e+00> : vector<8x64xf32>
    %101 = tpu.matmul %99, %100, %cst_57 {dimension_numbers = #tpu.dot_dimension_numbers<[1], [0], [0], [1], [0, 0, 1, 1], [], []>} : vector<8x128xf32>, vector<128x64xf32>, vector<8x64xf32> -> vector<8x64xf32>
    %c0_58 = arith.constant 0 : index
    %c0_59 = arith.constant 0 : index
    %102 = vector.load %arg17[%c0_58, %c0_59] : memref<1x64xf32, #tpu.memory_space<vmem>>, vector<1x64xf32>
    %103 = vector.broadcast %102 : vector<1x64xf32> to vector<8x64xf32>
    %104 = arith.mulf %101, %103 : vector<8x64xf32>
    %cst_60 = arith.constant dense<0.000000e+00> : vector<8xf32>
    %105 = vector.multi_reduction <add>, %104, %cst_60 [1] : vector<8x64xf32> to vector<8xf32>
    %106 = vector.shape_cast %105 : vector<8xf32> to vector<8x1xf32>
    %c0_61 = arith.constant 0 : index
    %c0_62 = arith.constant 0 : index
    %107 = vector.load %arg16[%c0_61, %c0_62] : memref<1x64xf32, #tpu.memory_space<vmem>>, vector<1x64xf32>
    %cst_63 = arith.constant dense<0.000000e+00> : vector<1x8xf32>
    %108 = tpu.matmul %107, %101, %cst_63 {dimension_numbers = #tpu.dot_dimension_numbers<[1], [1], [0], [0], [0, 0, 1, 0], [], []>} : vector<1x64xf32>, vector<8x64xf32>, vector<1x8xf32> -> vector<1x8xf32>
    %109 = vector.broadcast %106 : vector<8x1xf32> to vector<8x8xf32>
    %110 = vector.broadcast %108 : vector<1x8xf32> to vector<8x8xf32>
    %111 = arith.addf %109, %110 : vector<8x8xf32>
    %cst_64 = arith.constant 0.000000e+00 : f32
    %112 = vector.broadcast %cst_64 : f32 to vector<8x8xf32>
    %113 = arith.cmpf ogt, %111, %112 : vector<8x8xf32>
    %cst_65 = arith.constant 2.000000e-01 : f32
    %114 = vector.broadcast %cst_65 : f32 to vector<8x8xf32>
    %115 = arith.mulf %114, %111 : vector<8x8xf32>
    %116 = arith.select %113, %111, %115 : vector<8x8xi1>, vector<8x8xf32>
    %cst_66 = arith.constant -1.000000e+30 : f32
    %117 = vector.broadcast %cst_66 : f32 to vector<8x8xf32>
    %118 = arith.select %23, %116, %117 : vector<8x8xi1>, vector<8x8xf32>
    %cst_67 = arith.constant dense<0xFF800000> : vector<8xf32>
    %119 = vector.multi_reduction <maximumf>, %118, %cst_67 [1] : vector<8x8xf32> to vector<8xf32>
    %120 = vector.shape_cast %119 : vector<8xf32> to vector<8x1xf32>
    %121 = vector.broadcast %120 : vector<8x1xf32> to vector<8x8xf32>
    %122 = arith.subf %118, %121 : vector<8x8xf32>
    %123 = math.exp %122 : vector<8x8xf32>
    %cst_68 = arith.constant dense<0.000000e+00> : vector<8xf32>
    %124 = vector.multi_reduction <add>, %123, %cst_68 [1] : vector<8x8xf32> to vector<8xf32>
    %125 = vector.shape_cast %124 : vector<8xf32> to vector<8x1xf32>
    %126 = tpu.reciprocal %125 {approx = true} : vector<8x1xf32> -> vector<8x1xf32>
    %127 = vector.broadcast %126 : vector<8x1xf32> to vector<8x8xf32>
    %128 = arith.mulf %123, %127 : vector<8x8xf32>
    %cst_69 = arith.constant dense<0.000000e+00> : vector<8x64xf32>
    %129 = tpu.matmul %128, %101, %cst_69 {dimension_numbers = #tpu.dot_dimension_numbers<[1], [0], [0], [1], [0, 0, 1, 1], [], []>} : vector<8x8xf32>, vector<8x64xf32>, vector<8x64xf32> -> vector<8x64xf32>
    %c0_70 = arith.constant 0 : index
    %c0_71 = arith.constant 0 : index
    %130 = vector.load %arg18[%c0_70, %c0_71] : memref<1x64xf32, #tpu.memory_space<vmem>>, vector<1x64xf32>
    %131 = vector.broadcast %130 : vector<1x64xf32> to vector<8x64xf32>
    %132 = arith.addf %129, %131 : vector<8x64xf32>
    %cst_72 = arith.constant 0.000000e+00 : f32
    %133 = vector.broadcast %cst_72 : f32 to vector<8x64xf32>
    %134 = arith.cmpf ogt, %132, %133 : vector<8x64xf32>
    %cst_73 = arith.constant 0.00999999977 : f32
    %135 = vector.broadcast %cst_73 : f32 to vector<8x64xf32>
    %136 = arith.mulf %135, %132 : vector<8x64xf32>
    %137 = arith.select %134, %132, %136 : vector<8x64xi1>, vector<8x64xf32>
    %c0_74 = arith.constant 0 : index
    %c0_75 = arith.constant 0 : index
    %138 = vector.load %arg1[%c0_74, %c0_75] : memref<8x12xf32, #tpu.memory_space<vmem>>, vector<8x12xf32>
    %c0_76 = arith.constant 0 : index
    %c0_77 = arith.constant 0 : index
    %139 = vector.load %arg19[%c0_76, %c0_77] : memref<12x64xf32, #tpu.memory_space<vmem>>, vector<12x64xf32>
    %cst_78 = arith.constant dense<0.000000e+00> : vector<8x64xf32>
    %140 = tpu.matmul %138, %139, %cst_78 {dimension_numbers = #tpu.dot_dimension_numbers<[1], [0], [0], [1], [0, 0, 1, 1], [], []>} : vector<8x12xf32>, vector<12x64xf32>, vector<8x64xf32> -> vector<8x64xf32>
    %c0_79 = arith.constant 0 : index
    %c0_80 = arith.constant 0 : index
    %141 = vector.load %arg22[%c0_79, %c0_80] : memref<1x64xf32, #tpu.memory_space<vmem>>, vector<1x64xf32>
    %142 = vector.broadcast %141 : vector<1x64xf32> to vector<8x64xf32>
    %143 = arith.addf %140, %142 : vector<8x64xf32>
    %144 = arith.negf %143 : vector<8x64xf32>
    %145 = math.exp %144 : vector<8x64xf32>
    %cst_81 = arith.constant 1.000000e+00 : f32
    %146 = vector.broadcast %cst_81 : f32 to vector<8x64xf32>
    %147 = arith.addf %146, %145 : vector<8x64xf32>
    %148 = arith.divf %146, %147 : vector<8x64xf32>
    %c0_82 = arith.constant 0 : index
    %c0_83 = arith.constant 0 : index
    %149 = vector.load %arg20[%c0_82, %c0_83] : memref<12x64xf32, #tpu.memory_space<vmem>>, vector<12x64xf32>
    %cst_84 = arith.constant dense<0.000000e+00> : vector<8x64xf32>
    %150 = tpu.matmul %138, %149, %cst_84 {dimension_numbers = #tpu.dot_dimension_numbers<[1], [0], [0], [1], [0, 0, 1, 1], [], []>} : vector<8x12xf32>, vector<12x64xf32>, vector<8x64xf32> -> vector<8x64xf32>
    %c0_85 = arith.constant 0 : index
    %c0_86 = arith.constant 0 : index
    %151 = vector.load %arg23[%c0_85, %c0_86] : memref<1x64xf32, #tpu.memory_space<vmem>>, vector<1x64xf32>
    %152 = vector.broadcast %151 : vector<1x64xf32> to vector<8x64xf32>
    %153 = arith.addf %150, %152 : vector<8x64xf32>
    %154 = math.tanh %153 : vector<8x64xf32>
    %c0_87 = arith.constant 0 : index
    %c0_88 = arith.constant 0 : index
    %155 = vector.load %arg21[%c0_87, %c0_88] : memref<12x64xf32, #tpu.memory_space<vmem>>, vector<12x64xf32>
    %cst_89 = arith.constant dense<0.000000e+00> : vector<8x64xf32>
    %156 = tpu.matmul %138, %155, %cst_89 {dimension_numbers = #tpu.dot_dimension_numbers<[1], [0], [0], [1], [0, 0, 1, 1], [], []>} : vector<8x12xf32>, vector<12x64xf32>, vector<8x64xf32> -> vector<8x64xf32>
    %c0_90 = arith.constant 0 : index
    %c0_91 = arith.constant 0 : index
    %157 = vector.load %arg24[%c0_90, %c0_91] : memref<1x64xf32, #tpu.memory_space<vmem>>, vector<1x64xf32>
    %158 = vector.broadcast %157 : vector<1x64xf32> to vector<8x64xf32>
    %159 = arith.addf %156, %158 : vector<8x64xf32>
    %160 = arith.negf %159 : vector<8x64xf32>
    %161 = math.exp %160 : vector<8x64xf32>
    %cst_92 = arith.constant 1.000000e+00 : f32
    %162 = vector.broadcast %cst_92 : f32 to vector<8x64xf32>
    %163 = arith.addf %162, %161 : vector<8x64xf32>
    %164 = arith.divf %162, %163 : vector<8x64xf32>
    %165 = arith.mulf %148, %154 : vector<8x64xf32>
    %166 = math.tanh %165 : vector<8x64xf32>
    %167 = arith.mulf %164, %166 : vector<8x64xf32>
    %c0_93 = arith.constant 0 : index
    %c0_94 = arith.constant 0 : index
    %168 = vector.load %arg25[%c0_93, %c0_94] : memref<64x64xf32, #tpu.memory_space<vmem>>, vector<64x64xf32>
    %cst_95 = arith.constant dense<0.000000e+00> : vector<8x64xf32>
    %169 = tpu.matmul %167, %168, %cst_95 {dimension_numbers = #tpu.dot_dimension_numbers<[1], [0], [0], [1], [0, 0, 1, 1], [], []>} : vector<8x64xf32>, vector<64x64xf32>, vector<8x64xf32> -> vector<8x64xf32>
    %c0_96 = arith.constant 0 : index
    %c0_97 = arith.constant 0 : index
    %170 = vector.load %arg28[%c0_96, %c0_97] : memref<1x64xf32, #tpu.memory_space<vmem>>, vector<1x64xf32>
    %171 = vector.broadcast %170 : vector<1x64xf32> to vector<8x64xf32>
    %172 = arith.addf %169, %171 : vector<8x64xf32>
    %173 = arith.negf %172 : vector<8x64xf32>
    %174 = math.exp %173 : vector<8x64xf32>
    %cst_98 = arith.constant 1.000000e+00 : f32
    %175 = vector.broadcast %cst_98 : f32 to vector<8x64xf32>
    %176 = arith.addf %175, %174 : vector<8x64xf32>
    %177 = arith.divf %175, %176 : vector<8x64xf32>
    %c0_99 = arith.constant 0 : index
    %c0_100 = arith.constant 0 : index
    %178 = vector.load %arg26[%c0_99, %c0_100] : memref<64x64xf32, #tpu.memory_space<vmem>>, vector<64x64xf32>
    %cst_101 = arith.constant dense<0.000000e+00> : vector<8x64xf32>
    %179 = tpu.matmul %167, %178, %cst_101 {dimension_numbers = #tpu.dot_dimension_numbers<[1], [0], [0], [1], [0, 0, 1, 1], [], []>} : vector<8x64xf32>, vector<64x64xf32>, vector<8x64xf32> -> vector<8x64xf32>
    %c0_102 = arith.constant 0 : index
    %c0_103 = arith.constant 0 : index
    %180 = vector.load %arg29[%c0_102, %c0_103] : memref<1x64xf32, #tpu.memory_space<vmem>>, vector<1x64xf32>
    %181 = vector.broadcast %180 : vector<1x64xf32> to vector<8x64xf32>
    %182 = arith.addf %179, %181 : vector<8x64xf32>
    %183 = math.tanh %182 : vector<8x64xf32>
    %c0_104 = arith.constant 0 : index
    %c0_105 = arith.constant 0 : index
    %184 = vector.load %arg27[%c0_104, %c0_105] : memref<64x64xf32, #tpu.memory_space<vmem>>, vector<64x64xf32>
    %cst_106 = arith.constant dense<0.000000e+00> : vector<8x64xf32>
    %185 = tpu.matmul %167, %184, %cst_106 {dimension_numbers = #tpu.dot_dimension_numbers<[1], [0], [0], [1], [0, 0, 1, 1], [], []>} : vector<8x64xf32>, vector<64x64xf32>, vector<8x64xf32> -> vector<8x64xf32>
    %c0_107 = arith.constant 0 : index
    %c0_108 = arith.constant 0 : index
    %186 = vector.load %arg30[%c0_107, %c0_108] : memref<1x64xf32, #tpu.memory_space<vmem>>, vector<1x64xf32>
    %187 = vector.broadcast %186 : vector<1x64xf32> to vector<8x64xf32>
    %188 = arith.addf %185, %187 : vector<8x64xf32>
    %189 = arith.negf %188 : vector<8x64xf32>
    %190 = math.exp %189 : vector<8x64xf32>
    %cst_109 = arith.constant 1.000000e+00 : f32
    %191 = vector.broadcast %cst_109 : f32 to vector<8x64xf32>
    %192 = arith.addf %191, %190 : vector<8x64xf32>
    %193 = arith.divf %191, %192 : vector<8x64xf32>
    %194 = arith.mulf %177, %183 : vector<8x64xf32>
    %195 = math.tanh %194 : vector<8x64xf32>
    %196 = arith.mulf %193, %195 : vector<8x64xf32>
    %c0_110 = arith.constant 0 : index
    %c0_111 = arith.constant 0 : index
    %197 = vector.load %arg31[%c0_110, %c0_111] : memref<64x64xf32, #tpu.memory_space<vmem>>, vector<64x64xf32>
    %cst_112 = arith.constant dense<0.000000e+00> : vector<8x64xf32>
    %198 = tpu.matmul %196, %197, %cst_112 {dimension_numbers = #tpu.dot_dimension_numbers<[1], [0], [0], [1], [0, 0, 1, 1], [], []>} : vector<8x64xf32>, vector<64x64xf32>, vector<8x64xf32> -> vector<8x64xf32>
    %c0_113 = arith.constant 0 : index
    %c0_114 = arith.constant 0 : index
    %199 = vector.load %arg34[%c0_113, %c0_114] : memref<1x64xf32, #tpu.memory_space<vmem>>, vector<1x64xf32>
    %200 = vector.broadcast %199 : vector<1x64xf32> to vector<8x64xf32>
    %201 = arith.addf %198, %200 : vector<8x64xf32>
    %202 = arith.negf %201 : vector<8x64xf32>
    %203 = math.exp %202 : vector<8x64xf32>
    %cst_115 = arith.constant 1.000000e+00 : f32
    %204 = vector.broadcast %cst_115 : f32 to vector<8x64xf32>
    %205 = arith.addf %204, %203 : vector<8x64xf32>
    %206 = arith.divf %204, %205 : vector<8x64xf32>
    %c0_116 = arith.constant 0 : index
    %c0_117 = arith.constant 0 : index
    %207 = vector.load %arg32[%c0_116, %c0_117] : memref<64x64xf32, #tpu.memory_space<vmem>>, vector<64x64xf32>
    %cst_118 = arith.constant dense<0.000000e+00> : vector<8x64xf32>
    %208 = tpu.matmul %196, %207, %cst_118 {dimension_numbers = #tpu.dot_dimension_numbers<[1], [0], [0], [1], [0, 0, 1, 1], [], []>} : vector<8x64xf32>, vector<64x64xf32>, vector<8x64xf32> -> vector<8x64xf32>
    %c0_119 = arith.constant 0 : index
    %c0_120 = arith.constant 0 : index
    %209 = vector.load %arg35[%c0_119, %c0_120] : memref<1x64xf32, #tpu.memory_space<vmem>>, vector<1x64xf32>
    %210 = vector.broadcast %209 : vector<1x64xf32> to vector<8x64xf32>
    %211 = arith.addf %208, %210 : vector<8x64xf32>
    %212 = math.tanh %211 : vector<8x64xf32>
    %c0_121 = arith.constant 0 : index
    %c0_122 = arith.constant 0 : index
    %213 = vector.load %arg33[%c0_121, %c0_122] : memref<64x64xf32, #tpu.memory_space<vmem>>, vector<64x64xf32>
    %cst_123 = arith.constant dense<0.000000e+00> : vector<8x64xf32>
    %214 = tpu.matmul %196, %213, %cst_123 {dimension_numbers = #tpu.dot_dimension_numbers<[1], [0], [0], [1], [0, 0, 1, 1], [], []>} : vector<8x64xf32>, vector<64x64xf32>, vector<8x64xf32> -> vector<8x64xf32>
    %c0_124 = arith.constant 0 : index
    %c0_125 = arith.constant 0 : index
    %215 = vector.load %arg36[%c0_124, %c0_125] : memref<1x64xf32, #tpu.memory_space<vmem>>, vector<1x64xf32>
    %216 = vector.broadcast %215 : vector<1x64xf32> to vector<8x64xf32>
    %217 = arith.addf %214, %216 : vector<8x64xf32>
    %218 = arith.negf %217 : vector<8x64xf32>
    %219 = math.exp %218 : vector<8x64xf32>
    %cst_126 = arith.constant 1.000000e+00 : f32
    %220 = vector.broadcast %cst_126 : f32 to vector<8x64xf32>
    %221 = arith.addf %220, %219 : vector<8x64xf32>
    %222 = arith.divf %220, %221 : vector<8x64xf32>
    %223 = arith.mulf %206, %212 : vector<8x64xf32>
    %224 = math.tanh %223 : vector<8x64xf32>
    %225 = arith.mulf %222, %224 : vector<8x64xf32>
    %c0_127 = arith.constant 0 : index
    %c0_128 = arith.constant 0 : index
    %226 = vector.load %arg37[%c0_127, %c0_128] : memref<64x64xf32, #tpu.memory_space<vmem>>, vector<64x64xf32>
    %cst_129 = arith.constant dense<0.000000e+00> : vector<8x64xf32>
    %227 = tpu.matmul %225, %226, %cst_129 {dimension_numbers = #tpu.dot_dimension_numbers<[1], [0], [0], [1], [0, 0, 1, 1], [], []>} : vector<8x64xf32>, vector<64x64xf32>, vector<8x64xf32> -> vector<8x64xf32>
    %c0_130 = arith.constant 0 : index
    %c0_131 = arith.constant 0 : index
    %228 = vector.load %arg38[%c0_130, %c0_131] : memref<1x64xf32, #tpu.memory_space<vmem>>, vector<1x64xf32>
    %229 = vector.broadcast %228 : vector<1x64xf32> to vector<8x64xf32>
    %230 = arith.addf %227, %229 : vector<8x64xf32>
    %cst_132 = arith.constant 0.000000e+00 : f32
    %231 = vector.broadcast %cst_132 : f32 to vector<8x64xf32>
    %232 = arith.cmpf ogt, %230, %231 : vector<8x64xf32>
    %cst_133 = arith.constant 0.00999999977 : f32
    %233 = vector.broadcast %cst_133 : f32 to vector<8x64xf32>
    %234 = arith.mulf %233, %230 : vector<8x64xf32>
    %235 = arith.select %232, %230, %234 : vector<8x64xi1>, vector<8x64xf32>
    %c0_134 = arith.constant 0 : index
    %c0_135 = arith.constant 0 : index
    %236 = vector.load %arg39[%c0_134, %c0_135] : memref<64x64xf32, #tpu.memory_space<vmem>>, vector<64x64xf32>
    %cst_136 = arith.constant dense<0.000000e+00> : vector<8x64xf32>
    %237 = tpu.matmul %235, %236, %cst_136 {dimension_numbers = #tpu.dot_dimension_numbers<[1], [0], [0], [1], [0, 0, 1, 1], [], []>} : vector<8x64xf32>, vector<64x64xf32>, vector<8x64xf32> -> vector<8x64xf32>
    %c0_137 = arith.constant 0 : index
    %c0_138 = arith.constant 0 : index
    %238 = vector.load %arg40[%c0_137, %c0_138] : memref<1x64xf32, #tpu.memory_space<vmem>>, vector<1x64xf32>
    %239 = vector.broadcast %238 : vector<1x64xf32> to vector<8x64xf32>
    %240 = arith.addf %237, %239 : vector<8x64xf32>
    %cst_139 = arith.constant 0.000000e+00 : f32
    %241 = vector.broadcast %cst_139 : f32 to vector<8x64xf32>
    %242 = arith.cmpf ogt, %240, %241 : vector<8x64xf32>
    %cst_140 = arith.constant 0.00999999977 : f32
    %243 = vector.broadcast %cst_140 : f32 to vector<8x64xf32>
    %244 = arith.mulf %243, %240 : vector<8x64xf32>
    %245 = arith.select %242, %240, %244 : vector<8x64xi1>, vector<8x64xf32>
    %c0_141 = arith.constant 0 : index
    %c0_142 = arith.constant 0 : index
    %246 = vector.load %arg41[%c0_141, %c0_142] : memref<64x64xf32, #tpu.memory_space<vmem>>, vector<64x64xf32>
    %cst_143 = arith.constant dense<0.000000e+00> : vector<8x64xf32>
    %247 = tpu.matmul %137, %246, %cst_143 {dimension_numbers = #tpu.dot_dimension_numbers<[1], [0], [0], [1], [0, 0, 1, 1], [], []>} : vector<8x64xf32>, vector<64x64xf32>, vector<8x64xf32> -> vector<8x64xf32>
    %c0_144 = arith.constant 0 : index
    %c0_145 = arith.constant 0 : index
    %248 = vector.load %arg42[%c0_144, %c0_145] : memref<64x64xf32, #tpu.memory_space<vmem>>, vector<64x64xf32>
    %cst_146 = arith.constant dense<0.000000e+00> : vector<8x64xf32>
    %249 = tpu.matmul %245, %248, %cst_146 {dimension_numbers = #tpu.dot_dimension_numbers<[1], [0], [0], [1], [0, 0, 1, 1], [], []>} : vector<8x64xf32>, vector<64x64xf32>, vector<8x64xf32> -> vector<8x64xf32>
    %250 = arith.addf %247, %249 : vector<8x64xf32>
    %c0_147 = arith.constant 0 : index
    %c0_148 = arith.constant 0 : index
    %251 = vector.load %arg43[%c0_147, %c0_148] : memref<1x64xf32, #tpu.memory_space<vmem>>, vector<1x64xf32>
    %252 = vector.broadcast %251 : vector<1x64xf32> to vector<8x64xf32>
    %253 = arith.addf %250, %252 : vector<8x64xf32>
    %cst_149 = arith.constant 0.000000e+00 : f32
    %254 = vector.broadcast %cst_149 : f32 to vector<8x64xf32>
    %255 = arith.maximumf %253, %254 : vector<8x64xf32>
    %c0_150 = arith.constant 0 : index
    %c0_151 = arith.constant 0 : index
    %256 = vector.load %arg44[%c0_150, %c0_151] : memref<64x64xf32, #tpu.memory_space<vmem>>, vector<64x64xf32>
    %cst_152 = arith.constant dense<0.000000e+00> : vector<8x64xf32>
    %257 = tpu.matmul %255, %256, %cst_152 {dimension_numbers = #tpu.dot_dimension_numbers<[1], [0], [0], [1], [0, 0, 1, 1], [], []>} : vector<8x64xf32>, vector<64x64xf32>, vector<8x64xf32> -> vector<8x64xf32>
    %c0_153 = arith.constant 0 : index
    %c0_154 = arith.constant 0 : index
    %258 = vector.load %arg45[%c0_153, %c0_154] : memref<1x64xf32, #tpu.memory_space<vmem>>, vector<1x64xf32>
    %259 = vector.broadcast %258 : vector<1x64xf32> to vector<8x64xf32>
    %260 = arith.addf %257, %259 : vector<8x64xf32>
    %cst_155 = arith.constant 0.000000e+00 : f32
    %261 = vector.broadcast %cst_155 : f32 to vector<8x64xf32>
    %262 = arith.maximumf %260, %261 : vector<8x64xf32>
    %c0_156 = arith.constant 0 : index
    %c0_157 = arith.constant 0 : index
    %263 = vector.load %arg46[%c0_156, %c0_157] : memref<64x4xf32, #tpu.memory_space<vmem>>, vector<64x4xf32>
    %cst_158 = arith.constant dense<0.000000e+00> : vector<8x4xf32>
    %264 = tpu.matmul %262, %263, %cst_158 {dimension_numbers = #tpu.dot_dimension_numbers<[1], [0], [0], [1], [0, 0, 1, 1], [], []>} : vector<8x64xf32>, vector<64x4xf32>, vector<8x4xf32> -> vector<8x4xf32>
    %c0_159 = arith.constant 0 : index
    %c0_160 = arith.constant 0 : index
    %265 = vector.load %arg47[%c0_159, %c0_160] : memref<1x4xf32, #tpu.memory_space<vmem>>, vector<1x4xf32>
    %266 = vector.broadcast %265 : vector<1x4xf32> to vector<8x4xf32>
    %267 = arith.addf %264, %266 : vector<8x4xf32>
    %c0_161 = arith.constant 0 : index
    %c0_162 = arith.constant 0 : index
    %268 = vector.load %arg48[%c0_161, %c0_162] : memref<8x4xf32, #tpu.memory_space<vmem>>, vector<8x4xf32>
    tpu.vector_store %arg48[%c0_161, %c0_162], %267 {strides = array<i32>} : memref<8x4xf32, #tpu.memory_space<vmem>>, vector<8x4xf32>,
    return
  }
}

</mosaic_0001>

<bundles_post_ra>
// kernel: sfgat_forward.1
= control target key start
LH: loop header
LB: loop body
LE: loop exit
PB: predicated region body
PF: predicated region fallthrough
CT: control target
= control target key end

     0   :  { %s2882_s6 = smov 1   ;;  %s2883_s10 = smov 2   ;;  %s3527_s0 = inlined_call_operand.smem [shape: u32[49], index: -1, kind: input, shape index: {}] }
   0x1   :  { %s2975_s5 = sld [smem:[%s3527_s0]]   ;;  %s2884_s14 = smov 3  }
   0x2   :  { %s2980_s9 = sld [smem:[%s3527_s0 + %s2882_s6]]   ;;  %s2885_s18 = smov 4  }
   0x3   :  { %s2985_s13 = sld [smem:[%s3527_s0 + %s2883_s10]]   ;;  %s2886_s22 = smov 5  }
   0x4   :  { %s2990_s17 = sld [smem:[%s3527_s0 + %s2884_s14]]   ;;  %s2887_s26 = smov 6  }
   0x5   :  { %s2995_s21 = sld [smem:[%s3527_s0 + %s2885_s18]]   ;;  %s2888_s30 = smov 7  }
   0x6   :  { %s3000_s25 = sld [smem:[%s3527_s0 + %s2886_s22]]   ;;  %s2889_s4 = smov 8  }
   0x7   :  { %3552 = sst [smem:[#allocation73_spill]] %s2975_s5  ;;  %s2890_s10 = smov 9  }
   0x8   :  { %3553 = sst [smem:[#allocation74_spill]] %s2980_s9  ;;  %s2891_s15 = smov 10  }
   0x9   :  { %3554 = sst [smem:[#allocation75_spill]] %s2985_s13  ;;  %s2892_s20 = smov 11  }
   0xa   :  { %3555 = sst [smem:[#allocation76_spill]] %s2990_s17  ;;  %s2894_s1 = smov 13  }
   0xb   :  { %3556 = sst [smem:[#allocation77_spill]] %s2995_s21  ;;  %s2895_s7 = smov 14  }
   0xc   :  { %3557 = sst [smem:[#allocation78_spill]] %s3000_s25  ;;  %s2897_s22 = smov 16  }
   0xd   :  { %s3005_s29 = sld [smem:[%s3527_s0 + %s2887_s26]]   ;;  %s2893_s26 = smov 12  }
   0xe   :  { %s3010_s3 = sld [smem:[%s3527_s0 + %s2888_s30]]   ;;  %s2898_s28 = smov 17  }
   0xf   :  { %s3015_s8 = sld [smem:[%s3527_s0 + %s2889_s4]]  }
  0x10   :  { %s3020_s14 = sld [smem:[%s3527_s0 + %s2890_s10]]  }
  0x11   :  { %s3025_s19 = sld [smem:[%s3527_s0 + %s2891_s15]]   ;;  %s2896_s15 = smov 15  }
  0x12   :  { %s3030_s24 = sld [smem:[%s3527_s0 + %s2892_s20]]  }
  0x13   :  { %3558 = sst [smem:[#allocation79_spill]] %s3005_s29 }
  0x14   :  { %3559 = sst [smem:[#allocation80_spill]] %s3010_s3 }
  0x15   :  { %3560 = sst [smem:[#allocation81_spill]] %s3015_s8 }
  0x16   :  { %s3035_s30 = sld [smem:[%s3527_s0 + %s2893_s26]]  }
  0x17   :  { %3561 = sst [smem:[#allocation82_spill]] %s3025_s19 }
  0x18   :  { %3562 = sst [smem:[#allocation83_spill]] %s3030_s24 }
  0x19   :  { %s3040_s6 = sld [smem:[%s3527_s0 + %s2894_s1]]  }
  0x1a   :  { %s3045_s12 = sld [smem:[%s3527_s0 + %s2895_s7]]   ;;  %s2899_s7 = smov 18  }
  0x1b   :  { %s3050_s20 = sld [smem:[%s3527_s0 + %s2896_s15]]   ;;  %s2900_s15 = smov 19  }
  0x1c   :  { %s3055_s27 = sld [smem:[%s3527_s0 + %s2897_s22]]   ;;  %s2901_s22 = smov 20  }
  0x1d   :  { %s3060_s4 = sld [smem:[%s3527_s0 + %s2898_s28]]   ;;  %s2902_s28 = smov 21  }
  0x1e   :  { %s3065_s9 = sld [smem:[%s3527_s0 + %s2899_s7]]   ;;  %s2903_s7 = smov 22  }
  0x1f   :  { %3563 = sst [smem:[#allocation84_spill]] %s3040_s6 }
  0x20   :  { %s3075_s24 = sld [smem:[%s3527_s0 + %s2901_s22]]   ;;  %s2905_s22 = smov 24  }
  0x21   :  { %3564 = sst [smem:[#allocation85_spill]] %s3050_s20 }
  0x22   :  { %3565 = sst [smem:[#allocation86_spill]] %s3055_s27 }
  0x23   :  { %s3070_s20 = sld [smem:[%s3527_s0 + %s2900_s15]]   ;;  %s2904_s15 = smov 23  }
  0x24   :  { %3566 = sst [smem:[#allocation87_spill]] %s3065_s9 }
  0x25   :  { %s3080_s13 = sld [smem:[%s3527_s0 + %s2902_s28]]   ;;  %s2906_s28 = smov 25  }
  0x26   :  { %s3085_s8 = sld [smem:[%s3527_s0 + %s2903_s7]]   ;;  %s2907_s7 = smov 26  }
  0x27   :  { %s3095_s29 = sld [smem:[%s3527_s0 + %s2905_s22]]   ;;  %s2909_s22 = smov 28  }
  0x28   :  { %s3100_s21 = sld [smem:[%s3527_s0 + %s2906_s28]]   ;;  %s2910_s28 = smov 29  }
  0x29   :  { %3567 = sst [smem:[#allocation88_spill]] %s3070_s20 }
  0x2a   :  { %s3090_s20 = sld [smem:[%s3527_s0 + %s2904_s15]]   ;;  %s2908_s15 = smov 27  }
  0x2b   :  { %3568 = sst [smem:[#allocation89_spill]] %s3080_s13 }
  0x2c   :  { %3569 = sst [smem:[#allocation90_spill]] %s3085_s8 }
  0x2d   :  { %3570 = sst [smem:[#allocation91_spill]] %s3095_s29 }
  0x2e   :  { %s3105_s8 = sld [smem:[%s3527_s0 + %s2907_s7]]   ;;  %s2911_s7 = smov 30  }
  0x2f   :  { %s3110_s25 = sld [smem:[%s3527_s0 + %s2908_s15]]   ;;  %s2912_s15 = smov 31  }
  0x30   :  { %s3115_s5 = sld [smem:[%s3527_s0 + %s2909_s22]]   ;;  %s2913_s22 = smov 32  }
  0x31   :  { %s3120_s17 = sld [smem:[%s3527_s0 + %s2910_s28]]   ;;  %s2914_s28 = smov 33  }
  0x32   :  { %s3130_s29 = sld [smem:[%s3527_s0 + %s2912_s15]]   ;;  %s2916_s15 = smov 35  }
  0x33   :  { %s3140_s13 = sld [smem:[%s3527_s0 + %s2914_s28]]   ;;  %s2918_s28 = smov 37  }
  0x34   :  { %3571 = sst [smem:[#allocation92_spill]] %s3105_s8 }
  0x35   :  { %s3125_s8 = sld [smem:[%s3527_s0 + %s2911_s7]]   ;;  %s2915_s7 = smov 34  }
  0x36   :  { %3572 = sst [smem:[#allocation93_spill]] %s3115_s5 }
  0x37   :  { %s3135_s5 = sld [smem:[%s3527_s0 + %s2913_s22]]   ;;  %s2917_s22 = smov 36  }
  0x38   :  { %s3150_s9 = sld [smem:[%s3527_s0 + %s2916_s15]]   ;;  %s2920_s15 = smov 39  }
  0x39   :  { %s3160_s27 = sld [smem:[%s3527_s0 + %s2918_s28]]   ;;  %s2922_s28 = smov 41  }
  0x3a   :  { %s3170_s6 = sld [smem:[%s3527_s0 + %s2920_s15]]   ;;  %s2924_s15 = smov 43  }
  0x3b   :  { %3573 = sst [smem:[#allocation94_spill]] %s3125_s8 }
  0x3c   :  { %s3145_s8 = sld [smem:[%s3527_s0 + %s2915_s7]]   ;;  %s2919_s7 = smov 38  }
  0x3d   :  { %3574 = sst [smem:[#allocation95_spill]] %s3135_s5 }
  0x3e   :  { %s3155_s5 = sld [smem:[%s3527_s0 + %s2917_s22]]   ;;  %s2921_s22 = smov 40  }
  0x3f   :  { %s3180_s19 = sld [smem:[%s3527_s0 + %s2922_s28]]   ;;  %s2926_s28 = smov 45  }
  0x40   :  { %s3190_s3 = sld [smem:[%s3527_s0 + %s2924_s15]]   ;;  %s2928_s15 = smov 47  }
  0x42   :  { %3575 = sst [smem:[#allocation96_spill]] %s3145_s8 }
  0x43   :  { %s3165_s8 = sld [smem:[%s3527_s0 + %s2919_s7]]   ;;  %s2923_s7 = smov 42  }
  0x44   :  { %3576 = sst [smem:[#allocation97_spill]] %s3155_s5 }
  0x45   :  { %s3175_s5 = sld [smem:[%s3527_s0 + %s2921_s22]]   ;;  %s2925_s22 = smov 44  }
  0x46   :  { %3579 = sst [smem:[#allocation100_spill]] %s3180_s19 }
  0x47   :  { %3581 = sst [smem:[#allocation102_spill]] %s3190_s3 }
  0x48   :  { %s3200_s19 = sld [smem:[%s3527_s0 + %s2926_s28]]  }
  0x49   :  { %3577 = sst [smem:[#allocation98_spill]] %s3165_s8 }
  0x4a   :  { %s3185_s8 = sld [smem:[%s3527_s0 + %s2923_s7]]   ;;  %s2927_s7 = smov 46  }
  0x4b   :  { %3578 = sst [smem:[#allocation99_spill]] %s3175_s5 }
  0x4c   :  { %s3195_s5 = sld [smem:[%s3527_s0 + %s2925_s22]]   ;;  %s2929_s22 = smov 48  }
  0x4d   :  { %s3210_s3 = sld [smem:[%s3527_s0 + %s2928_s15]]  }
  0x50   :  { %3580 = sst [smem:[#allocation101_spill]] %s3185_s8 }
  0x51   :  { %s3205_s8 = sld [smem:[%s3527_s0 + %s2927_s7]]  }
  0x52   :  { %3582 = sst [smem:[#allocation103_spill]] %s3195_s5 }
  0x53   :  { %s3215_s5 = sld [smem:[%s3527_s0 + %s2929_s22]]  }
  0x54   :  { %102 = vsyncpa [#allocation3], 0 }
  0x55   :  { %103 = vsyncpa [#allocation5], 0 }
  0x56   :  { %104 = vsyncpa [#allocation8], 0 }
  0x57   :  { %105 = vsyncpa [#allocation11], 0 }
  0x58   :  { %106 = vsyncpa [#allocation14], 0 }
  0x59   :  { %107 = vsyncpa [#allocation17], 0 }
  0x5a   :  { %108 = vsyncpa [#allocation20], 0 }
  0x5b   :  { %109 = vsyncpa [#allocation23], 0 }
  0x5c   :  { %110 = vsyncpa [#allocation26], 0 }
  0x5d   :  { %111 = vsyncpa [#allocation29], 0 }
  0x5e   :  { %112 = vsyncpa [#allocation32], 0 }
  0x5f   :  { %113 = vsyncpa [#allocation35], 0 }
  0x60   :  { %114 = vsyncpa [#allocation38], 0 }
  0x61   :  { %115 = vsyncpa [#allocation41], 0 }
  0x62   :  { %116 = vsyncpa [#allocation44], 0 }
  0x63   :  { %117 = vsyncpa [#allocation47], 0 }
  0x64   :  { %118 = vsyncpa [#allocation50], 0  ;;  %s154_s0 = sshll.u32 %s3020_s14, 4  ;;  %s155_s0 = int_to_ptr.hbm [resolvable:$true] %s154_s0 }
  0x65   :  { %119 = vsyncpa [#allocation53], 0  ;;  %s2930_s28 = smov [#allocation4]   ;;  %s178_s2 = sshll.u32 %s3035_s30, 4  ;;  %s179_s2 = int_to_ptr.hbm [resolvable:$true] %s178_s2 }
  0x66   :  { %s156_s1 = sshll.u32 %s2930_s28, 4  ;;  %s2006_s7 = sshra.s32 %s155_s0, 4  ;;  %s157_s1 = int_to_ptr.vmem [resolvable:$true] %s156_s1  ;;  %s2007_s7 = int_to_ptr.hbm [resolvable:$true] %s2006_s7 }
  0x67   :  { %s2008_s10 = scalar_lea.hbm %s2007_s7, 1  ;;  %s2010_s11 = scalar_lea.hbm %s3020_s14, 1 }
  0x68   :  { %p2009_p0 = scmp.ne.s32.totalorder %s2007_s7, %s2008_s10  ;;  %p2011_p1 = scmp.lt.s32.totalorder %s2007_s7, %s3020_s14 }
  0x69   :  { %p2012_p2 = scmp.lt.s32.totalorder %s2010_s11, %s2008_s10 }
  0x6b   :  { %p2013_p3 = por %p2012_p2, %p2011_p1 }
  0x6d   :  { %p2014_p4 = pnand %p2013_p3, %p2009_p0 }
  0x6f   :  { %2017 = shalt.err (!%p2014_p4)
}
  0x70   :  { %159 = dma.hbm_to_vmem [thread:$0]  %s155_s0, 16, %s157_s1, [#allocation5]  }
  0x71   :  { %s2931_s15 = smov [#allocation7]   ;;  %s200_s18 = sshll.u32 %s3045_s12, 4  ;;  %s201_s18 = int_to_ptr.hbm [resolvable:$true] %s200_s18 }
  0x72   :  { %s180_s16 = sshll.u32 %s2931_s15, 4  ;;  %s2030_s22 = sshra.s32 %s179_s2, 4  ;;  %s181_s16 = int_to_ptr.vmem [resolvable:$true] %s180_s16  ;;  %s2031_s22 = int_to_ptr.hbm [resolvable:$true] %s2030_s22 }
  0x73   :  { %s2032_s23 = scalar_lea.hbm %s2031_s22, 1  ;;  %s2034_s26 = scalar_lea.hbm %s3035_s30, 1 }
  0x74   :  { %p2033_p5 = scmp.ne.s32.totalorder %s2031_s22, %s2032_s23  ;;  %p2035_p6 = scmp.lt.s32.totalorder %s2031_s22, %s3035_s30 }
  0x75   :  { %p2036_p7 = scmp.lt.s32.totalorder %s2034_s26, %s2032_s23 }
  0x77   :  { %p2037_p8 = por %p2036_p7, %p2035_p6 }
  0x79   :  { %p2038_p9 = pnand %p2037_p8, %p2033_p5 }
  0x7b   :  { %2041 = shalt.err (!%p2038_p9)
}
  0x7c   :  { %183 = dma.hbm_to_vmem [thread:$0]  %s179_s2, 16, %s181_s16, [#allocation8]  }
  0x7d   :  { %s224_s14 = sshll.u32 %s3060_s4, 4  ;;  %s2932_s0 = smov [#allocation10]   ;;  %s225_s14 = int_to_ptr.hbm [resolvable:$true] %s224_s14 }
  0x7e   :  { %s202_s28 = sshll.u32 %s2932_s0, 4  ;;  %s2054_s1 = sshra.s32 %s201_s18, 4  ;;  %s203_s28 = int_to_ptr.vmem [resolvable:$true] %s202_s28  ;;  %s2055_s1 = int_to_ptr.hbm [resolvable:$true] %s2054_s1 }
  0x7f   :  { %s2056_s7 = scalar_lea.hbm %s2055_s1, 1  ;;  %s2058_s10 = scalar_lea.hbm %s3045_s12, 1 }
  0x80   :  { %p2057_p10 = scmp.ne.s32.totalorder %s2055_s1, %s2056_s7  ;;  %p2059_p11 = scmp.lt.s32.totalorder %s2055_s1, %s3045_s12 }
  0x81   :  { %p2060_p12 = scmp.lt.s32.totalorder %s2058_s10, %s2056_s7 }
  0x83   :  { %p2061_p13 = por %p2060_p12, %p2059_p11 }
  0x85   :  { %p2062_p0 = pnand %p2061_p13, %p2057_p10 }
  0x87   :  { %2065 = shalt.err (!%p2062_p0)
}
  0x88   :  { %205 = dma.hbm_to_vmem [thread:$0]  %s201_s18, 16, %s203_s28, [#allocation11]  }
  0x89   :  { %s2933_s30 = smov [#allocation13]   ;;  %s2078_s11 = sshra.s32 %s225_s14, 4  ;;  %s2079_s11 = int_to_ptr.hbm [resolvable:$true] %s2078_s11 }
  0x8a   :  { %s226_s2 = sshll.u32 %s2933_s30, 4  ;;  %s2080_s15 = scalar_lea.hbm %s2079_s11, 1  ;;  %s227_s2 = int_to_ptr.vmem [resolvable:$true] %s226_s2 }
  0x8b   :  { %p2081_p1 = scmp.ne.s32.totalorder %s2079_s11, %s2080_s15  ;;  %s2082_s16 = scalar_lea.hbm %s3060_s4, 1 }
  0x8c   :  { %p2083_p2 = scmp.lt.s32.totalorder %s2079_s11, %s3060_s4  ;;  %p2084_p3 = scmp.lt.s32.totalorder %s2082_s16, %s2080_s15 }
  0x8e   :  { %p2085_p4 = por %p2084_p3, %p2083_p2 }
  0x90   :  { %p2086_p5 = pnand %p2085_p4, %p2081_p1 }
  0x92   :  { %2089 = shalt.err (!%p2086_p5)
}
  0x93   :  { %229 = dma.hbm_to_vmem [thread:$0]  %s225_s14, 16, %s227_s2, [#allocation14]  }
  0x94   :  { %s247_s12 = sshll.u32 %s3075_s24, 4  ;;  %s2934_s18 = smov [#allocation16]   ;;  %s248_s12 = int_to_ptr.hbm [resolvable:$true] %s247_s12 }
  0x95   :  { %s249_s22 = sshll.u32 %s2934_s18, 4  ;;  %s276_s23 = sshll.u32 %s3090_s20, 4  ;;  %s250_s22 = int_to_ptr.vmem [resolvable:$true] %s249_s22  ;;  %s277_s23 = int_to_ptr.hbm [resolvable:$true] %s276_s23 }
  0x96   :  { %s2102_s26 = sshra.s32 %s248_s12, 4  ;;  %s2106_s4 = scalar_lea.hbm %s3075_s24, 16  ;;  %s2103_s26 = int_to_ptr.hbm [resolvable:$true] %s2102_s26 }
  0x97   :  { %s2104_s0 = scalar_lea.hbm %s2103_s26, 16  ;;  %p2107_p7 = scmp.lt.s32.totalorder %s2103_s26, %s3075_s24 }
  0x98   :  { %p2105_p6 = scmp.ne.s32.totalorder %s2103_s26, %s2104_s0  ;;  %p2108_p8 = scmp.lt.s32.totalorder %s2106_s4, %s2104_s0 }
  0x9a   :  { %p2109_p9 = por %p2108_p8, %p2107_p7 }
  0x9c   :  { %p2110_p10 = pnand %p2109_p9, %p2105_p6 }
  0x9e   :  { %2113 = shalt.err (!%p2110_p10)
}
  0x9f   :  { %s2935_s14 = smov 128   ;;  %s2936_s28 = smov 8  }
  0xa0   :  { %255 = dma.hbm_to_vmem [thread:$0]  %s248_s12, 256, %s250_s22, [#allocation17], %s2935_s14, %s2935_s14, %s2936_s28  }
  0xa1   :  { %s2937_s1 = smov [#allocation19]   ;;  %s297_s10 = sshll.u32 %s3100_s21, 4  ;;  %s3237_s10 = int_to_ptr.hbm [resolvable:$true] %s297_s10 }
  0xa2   :  { %s278_s7 = sshll.u32 %s2937_s1, 4  ;;  %s2126_s24 = sshra.s32 %s277_s23, 4  ;;  %s279_s7 = int_to_ptr.vmem [resolvable:$true] %s278_s7  ;;  %s2127_s24 = int_to_ptr.hbm [resolvable:$true] %s2126_s24 }
  0xa3   :  { %s2128_s30 = scalar_lea.hbm %s2127_s24, 1  ;;  %s2130_s2 = scalar_lea.hbm %s3090_s20, 1 }
  0xa4   :  { %p2129_p11 = scmp.ne.s32.totalorder %s2127_s24, %s2128_s30  ;;  %p2131_p12 = scmp.lt.s32.totalorder %s2127_s24, %s3090_s20 }
  0xa5   :  { %p2132_p13 = scmp.lt.s32.totalorder %s2130_s2, %s2128_s30 }
  0xa7   :  { %p2133_p0 = por %p2132_p13, %p2131_p12 }
  0xa9   :  { %p2134_p1 = pnand %p2133_p0, %p2129_p11 }
  0xab   :  { %2137 = shalt.err (!%p2134_p1)
}
  0xac   :  { %281 = dma.hbm_to_vmem [thread:$0]  %s277_s23, 16, %s279_s7, [#allocation20]  }
  0xad   :  { %s323_s11 = sshll.u32 %s3110_s25, 4  ;;  %s2938_s15 = smov [#allocation22]   ;;  %s3242_s11 = int_to_ptr.hbm [resolvable:$true] %s323_s11 }
  0xae   :  { %s299_s16 = sshll.u32 %s2938_s15, 4  ;;  %s2150_s12 = sshra.s32 %s3237_s10, 4  ;;  %s300_s16 = int_to_ptr.vmem [resolvable:$true] %s299_s16  ;;  %s2151_s12 = int_to_ptr.hbm [resolvable:$true] %s2150_s12 }
  0xaf   :  { %s2152_s18 = scalar_lea.hbm %s2151_s12, 64  ;;  %s2154_s20 = scalar_lea.hbm %s3100_s21, 64 }
  0xb0   :  { %p2153_p2 = scmp.ne.s32.totalorder %s2151_s12, %s2152_s18  ;;  %p2155_p3 = scmp.lt.s32.totalorder %s2151_s12, %s3100_s21 }
  0xb1   :  { %p2156_p4 = scmp.lt.s32.totalorder %s2154_s20, %s2152_s18 }
  0xb3   :  { %p2157_p5 = por %p2156_p4, %p2155_p3 }
  0xb5   :  { %p2158_p6 = pnand %p2157_p5, %p2153_p2 }
  0xb7   :  { %2161 = shalt.err (!%p2158_p6)
}
  0xb8   :  { %305 = dma.hbm_to_vmem [thread:$0]  %s3237_s10, 1024, %s300_s16, [#allocation23], %s2935_s14, %s2935_s14, %s2936_s28  }
  0xb9   :  { %s2939_s22 = smov [#allocation25]   ;;  %s348_s26 = sshll.u32 %s3120_s17, 4  ;;  %s349_s26 = int_to_ptr.hbm [resolvable:$true] %s348_s26 }
  0xba   :  { %s325_s23 = sshll.u32 %s2939_s22, 4  ;;  %s2174_s0 = sshra.s32 %s3242_s11, 4  ;;  %s326_s23 = int_to_ptr.vmem [resolvable:$true] %s325_s23  ;;  %s2175_s0 = int_to_ptr.hbm [resolvable:$true] %s2174_s0 }
  0xbb   :  { %s2176_s21 = scalar_lea.hbm %s2175_s0, 64  ;;  %s2178_s4 = scalar_lea.hbm %s3110_s25, 64 }
  0xbc   :  { %p2177_p7 = scmp.ne.s32.totalorder %s2175_s0, %s2176_s21  ;;  %p2179_p8 = scmp.lt.s32.totalorder %s2175_s0, %s3110_s25 }
  0xbd   :  { %p2180_p9 = scmp.lt.s32.totalorder %s2178_s4, %s2176_s21 }
  0xbf   :  { %p2181_p10 = por %p2180_p9, %p2179_p8 }
  0xc1   :  { %p2182_p11 = pnand %p2181_p10, %p2177_p7 }
  0xc3   :  { %2185 = shalt.err (!%p2182_p11)
}
  0xc4   :  { %331 = dma.hbm_to_vmem [thread:$0]  %s3242_s11, 1024, %s326_s23, [#allocation26], %s2935_s14, %s2935_s14, %s2936_s28  }
  0xc5   :  { %s369_s1 = sshll.u32 %s3130_s29, 4  ;;  %s2940_s7 = smov [#allocation28]   ;;  %s3260_s1 = int_to_ptr.hbm [resolvable:$true] %s369_s1 }
  0xc6   :  { %s350_s10 = sshll.u32 %s2940_s7, 4  ;;  %s2198_s24 = sshra.s32 %s349_s26, 4  ;;  %s351_s10 = int_to_ptr.vmem [resolvable:$true] %s350_s10  ;;  %s2199_s24 = int_to_ptr.hbm [resolvable:$true] %s2198_s24 }
  0xc7   :  { %s2200_s25 = scalar_lea.hbm %s2199_s24, 1  ;;  %s2202_s30 = scalar_lea.hbm %s3120_s17, 1 }
  0xc8   :  { %p2201_p12 = scmp.ne.s32.totalorder %s2199_s24, %s2200_s25  ;;  %p2203_p13 = scmp.lt.s32.totalorder %s2199_s24, %s3120_s17 }
  0xc9   :  { %p2204_p0 = scmp.lt.s32.totalorder %s2202_s30, %s2200_s25 }
  0xcb   :  { %p2205_p1 = por %p2204_p0, %p2203_p13 }
  0xcd   :  { %p2206_p2 = pnand %p2205_p1, %p2201_p12 }
  0xcf   :  { %2209 = shalt.err (!%p2206_p2)
}
  0xd0   :  { %353 = dma.hbm_to_vmem [thread:$0]  %s349_s26, 16, %s351_s10, [#allocation29]  }
  0xd1   :  { %s2941_s2 = smov [#allocation31]   ;;  %s395_s15 = sshll.u32 %s3140_s13, 4  ;;  %s3265_s15 = int_to_ptr.hbm [resolvable:$true] %s395_s15 }
  0xd2   :  { %s371_s11 = sshll.u32 %s2941_s2, 4  ;;  %s2222_s16 = sshra.s32 %s3260_s1, 4  ;;  %s372_s11 = int_to_ptr.vmem [resolvable:$true] %s371_s11  ;;  %s2223_s16 = int_to_ptr.hbm [resolvable:$true] %s2222_s16 }
  0xd3   :  { %s2224_s12 = scalar_lea.hbm %s2223_s16, 64  ;;  %s2226_s17 = scalar_lea.hbm %s3130_s29, 64 }
  0xd4   :  { %p2225_p3 = scmp.ne.s32.totalorder %s2223_s16, %s2224_s12  ;;  %p2227_p4 = scmp.lt.s32.totalorder %s2223_s16, %s3130_s29 }
  0xd5   :  { %p2228_p5 = scmp.lt.s32.totalorder %s2226_s17, %s2224_s12 }
  0xd7   :  { %p2229_p6 = por %p2228_p5, %p2227_p4 }
  0xd9   :  { %p2230_p7 = pnand %p2229_p6, %p2225_p3 }
  0xdb   :  { %2233 = shalt.err (!%p2230_p7)
}
  0xdc   :  { %377 = dma.hbm_to_vmem [thread:$0]  %s3260_s1, 1024, %s372_s11, [#allocation32], %s2935_s14, %s2935_s14, %s2936_s28  }
  0xdd   :  { %s420_s18 = sshll.u32 %s3150_s9, 4  ;;  %s2942_s20 = smov [#allocation34]   ;;  %s421_s18 = int_to_ptr.hbm [resolvable:$true] %s420_s18 }
  0xde   :  { %s397_s22 = sshll.u32 %s2942_s20, 4  ;;  %s2246_s23 = sshra.s32 %s3265_s15, 4  ;;  %s398_s22 = int_to_ptr.vmem [resolvable:$true] %s397_s22  ;;  %s2247_s23 = int_to_ptr.hbm [resolvable:$true] %s2246_s23 }
  0xdf   :  { %s2248_s29 = scalar_lea.hbm %s2247_s23, 64  ;;  %s2250_s26 = scalar_lea.hbm %s3140_s13, 64 }
  0xe0   :  { %p2249_p8 = scmp.ne.s32.totalorder %s2247_s23, %s2248_s29  ;;  %p2251_p9 = scmp.lt.s32.totalorder %s2247_s23, %s3140_s13 }
  0xe1   :  { %p2252_p10 = scmp.lt.s32.totalorder %s2250_s26, %s2248_s29 }
  0xe3   :  { %p2253_p11 = por %p2252_p10, %p2251_p9 }
  0xe5   :  { %p2254_p12 = pnand %p2253_p11, %p2249_p8 }
  0xe7   :  { %2257 = shalt.err (!%p2254_p12)
}
  0xe8   :  { %403 = dma.hbm_to_vmem [thread:$0]  %s3265_s15, 1024, %s398_s22, [#allocation35], %s2935_s14, %s2935_s14, %s2936_s28  }
  0xe9   :  { %s2943_s0 = smov [#allocation37]   ;;  %s441_s4 = sshll.u32 %s3160_s27, 4  ;;  %s3283_s4 = int_to_ptr.hbm [resolvable:$true] %s441_s4 }
  0xea   :  { %s422_s21 = sshll.u32 %s2943_s0, 4  ;;  %s2270_s1 = sshra.s32 %s421_s18, 4  ;;  %s423_s21 = int_to_ptr.vmem [resolvable:$true] %s422_s21  ;;  %s2271_s1 = int_to_ptr.hbm [resolvable:$true] %s2270_s1 }
  0xeb   :  { %s2272_s13 = scalar_lea.hbm %s2271_s1, 1  ;;  %s2274_s7 = scalar_lea.hbm %s3150_s9, 1 }
  0xec   :  { %p2273_p13 = scmp.ne.s32.totalorder %s2271_s1, %s2272_s13  ;;  %p2275_p0 = scmp.lt.s32.totalorder %s2271_s1, %s3150_s9 }
  0xed   :  { %p2276_p1 = scmp.lt.s32.totalorder %s2274_s7, %s2272_s13 }
  0xef   :  { %p2277_p2 = por %p2276_p1, %p2275_p0 }
  0xf1   :  { %p2278_p3 = pnand %p2277_p2, %p2273_p13 }
  0xf3   :  { %2281 = shalt.err (!%p2278_p3)
}
  0xf4   :  { %425 = dma.hbm_to_vmem [thread:$0]  %s421_s18, 16, %s423_s21, [#allocation38]  }
  0xf5   :  { %s465_s10 = sshll.u32 %s3170_s6, 4  ;;  %s2944_s24 = smov [#allocation40]   ;;  %s3288_s10 = int_to_ptr.hbm [resolvable:$true] %s465_s10 }
  0xf6   :  { %s443_s25 = sshll.u32 %s2944_s24, 4  ;;  %s2294_s30 = sshra.s32 %s3283_s4, 4  ;;  %s444_s25 = int_to_ptr.vmem [resolvable:$true] %s443_s25  ;;  %s2295_s30 = int_to_ptr.hbm [resolvable:$true] %s2294_s30 }
  0xf7   :  { %s2296_s2 = scalar_lea.hbm %s2295_s30, 64  ;;  %s2298_s9 = scalar_lea.hbm %s3160_s27, 64 }
  0xf8   :  { %p2297_p4 = scmp.ne.s32.totalorder %s2295_s30, %s2296_s2  ;;  %p2299_p5 = scmp.lt.s32.totalorder %s2295_s30, %s3160_s27 }
  0xf9   :  { %p2300_p6 = scmp.lt.s32.totalorder %s2298_s9, %s2296_s2 }
  0xfb   :  { %p2301_p7 = por %p2300_p6, %p2299_p5 }
  0xfd   :  { %p2302_p8 = pnand %p2301_p7, %p2297_p4 }
  0xff   :  { %2305 = shalt.err (!%p2302_p8)
}
 0x100   :  { %s3583_s11 = sld [smem:[#allocation100_spill]]  ;;  %s2945_s15 = smov [#allocation43]  }
 0x101   :  { %449 = dma.hbm_to_vmem [thread:$0]  %s3283_s4, 1024, %s444_s25, [#allocation41], %s2935_s14, %s2935_s14, %s2936_s28  }
 0x102   :  { %s467_s16 = sshll.u32 %s2945_s15, 4  ;;  %s2318_s27 = sshra.s32 %s3288_s10, 4  ;;  %s468_s16 = int_to_ptr.vmem [resolvable:$true] %s467_s16  ;;  %s2319_s27 = int_to_ptr.hbm [resolvable:$true] %s2318_s27 }
 0x103   :  { %s2320_s17 = scalar_lea.hbm %s2319_s27, 64  ;;  %s2322_s18 = scalar_lea.hbm %s3170_s6, 64 }
 0x104   :  { %p2321_p9 = scmp.ne.s32.totalorder %s2319_s27, %s2320_s17  ;;  %p2323_p10 = scmp.lt.s32.totalorder %s2319_s27, %s3170_s6 }
 0x105   :  { %p2324_p11 = scmp.lt.s32.totalorder %s2322_s18, %s2320_s17 }
 0x106   :  { %s489_s12 = sshll.u32 %s3583_s11, 4  ;;  %s3298_s12 = int_to_ptr.hbm [resolvable:$true] %s489_s12 }
 0x107   :  { %p2325_p12 = por %p2324_p11, %p2323_p10 }
 0x109   :  { %p2326_p13 = pnand %p2325_p12, %p2321_p9 }
 0x10b   :  { %2329 = shalt.err (!%p2326_p13)
}
 0x10c   :  { %s3584_s20 = sld [smem:[#allocation102_spill]]  ;;  %s2946_s23 = smov [#allocation46]  }
 0x10d   :  { %473 = dma.hbm_to_vmem [thread:$0]  %s3288_s10, 1024, %s468_s16, [#allocation44], %s2935_s14, %s2935_s14, %s2936_s28  }
 0x10e   :  { %s491_s29 = sshll.u32 %s2946_s23, 4  ;;  %s2342_s26 = sshra.s32 %s3298_s12, 4  ;;  %s492_s29 = int_to_ptr.vmem [resolvable:$true] %s491_s29  ;;  %s2343_s26 = int_to_ptr.hbm [resolvable:$true] %s2342_s26 }
 0x10f   :  { %s2344_s6 = scalar_lea.hbm %s2343_s26, 64  ;;  %s2346_s0 = scalar_lea.hbm %s3583_s11, 64 }
 0x110   :  { %p2345_p0 = scmp.ne.s32.totalorder %s2343_s26, %s2344_s6  ;;  %p2347_p1 = scmp.lt.s32.totalorder %s2343_s26, %s3583_s11 }
 0x111   :  { %p2348_p2 = scmp.lt.s32.totalorder %s2346_s0, %s2344_s6 }
 0x112   :  { %s516_s22 = sshll.u32 %s3584_s20, 4  ;;  %s517_s22 = int_to_ptr.hbm [resolvable:$true] %s516_s22 }
 0x113   :  { %p2349_p3 = por %p2348_p2, %p2347_p1 }
 0x115   :  { %p2350_p4 = pnand %p2349_p3, %p2345_p0 }
 0x117   :  { %2353 = shalt.err (!%p2350_p4)
}
 0x118   :  { %497 = dma.hbm_to_vmem [thread:$0]  %s3298_s12, 1024, %s492_s29, [#allocation47], %s2935_s14, %s2935_s14, %s2936_s28  }
 0x119   :  { %s2947_s21 = smov [#allocation49]   ;;  %s540_s1 = sshll.u32 %s3200_s19, 4  ;;  %s541_s1 = int_to_ptr.hbm [resolvable:$true] %s540_s1 }
 0x11a   :  { %s518_s4 = sshll.u32 %s2947_s21, 4  ;;  %s2366_s13 = sshra.s32 %s517_s22, 4  ;;  %s519_s4 = int_to_ptr.vmem [resolvable:$true] %s518_s4  ;;  %s2367_s13 = int_to_ptr.hbm [resolvable:$true] %s2366_s13 }
 0x11b   :  { %s2368_s7 = scalar_lea.hbm %s2367_s13, 1  ;;  %s2370_s10 = scalar_lea.hbm %s3584_s20, 1 }
 0x11c   :  { %p2369_p5 = scmp.ne.s32.totalorder %s2367_s13, %s2368_s7  ;;  %p2371_p6 = scmp.lt.s32.totalorder %s2367_s13, %s3584_s20 }
 0x11d   :  { %p2372_p7 = scmp.lt.s32.totalorder %s2370_s10, %s2368_s7 }
 0x11f   :  { %p2373_p8 = por %p2372_p7, %p2371_p6 }
 0x121   :  { %p2374_p9 = pnand %p2373_p8, %p2369_p5 }
 0x123   :  { %2377 = shalt.err (!%p2374_p9)
}
 0x124   :  { %521 = dma.hbm_to_vmem [thread:$0]  %s517_s22, 16, %s519_s4, [#allocation50]  }
 0x125   :  { %s3585_s24 = sld [smem:[#allocation80_spill]]  ;;  %s2948_s30 = smov [#allocation52]  }
 0x126   :  { %s542_s2 = sshll.u32 %s2948_s30, 4  ;;  %s2390_s9 = sshra.s32 %s541_s1, 4  ;;  %s543_s2 = int_to_ptr.vmem [resolvable:$true] %s542_s2  ;;  %s2391_s9 = int_to_ptr.hbm [resolvable:$true] %s2390_s9 }
 0x127   :  { %s2392_s11 = scalar_lea.hbm %s2391_s9, 1  ;;  %s2394_s15 = scalar_lea.hbm %s3200_s19, 1 }
 0x128   :  { %p2393_p10 = scmp.ne.s32.totalorder %s2391_s9, %s2392_s11  ;;  %p2395_p11 = scmp.lt.s32.totalorder %s2391_s9, %s3200_s19 }
 0x129   :  { %p2396_p12 = scmp.lt.s32.totalorder %s2394_s15, %s2392_s11 }
 0x12b   :  { %s138_s25 = sshll.u32 %s3585_s24, 4  ;;  %p2397_p13 = por %p2396_p12, %p2395_p11  ;;  %s3319_s25 = int_to_ptr.hbm [resolvable:$true] %s138_s25 }
 0x12d   :  { %p2398_p0 = pnand %p2397_p13, %p2393_p10 }
 0x12f   :  { %2401 = shalt.err (!%p2398_p0)
}
 0x130   :  { %545 = dma.hbm_to_vmem [thread:$0]  %s541_s1, 16, %s543_s2, [#allocation53]  }
 0x131   :  { %s3586_s16 = sld [smem:[#allocation82_spill]]  ;;  %s2949_s12 = smov [#allocation2]  }
 0x132   :  { %s140_s27 = sshll.u32 %s2949_s12, 4  ;;  %s2414_s18 = sshra.s32 %s3319_s25, 4  ;;  %s141_s27 = int_to_ptr.vmem [resolvable:$true] %s140_s27  ;;  %s2415_s18 = int_to_ptr.hbm [resolvable:$true] %s2414_s18 }
 0x133   :  { %s2416_s20 = scalar_lea.hbm %s2415_s18, 64  ;;  %s2418_s22 = scalar_lea.hbm %s3585_s24, 64 }
 0x134   :  { %p2417_p1 = scmp.ne.s32.totalorder %s2415_s18, %s2416_s20  ;;  %p2419_p2 = scmp.lt.s32.totalorder %s2415_s18, %s3585_s24 }
 0x135   :  { %p2420_p3 = scmp.lt.s32.totalorder %s2418_s22, %s2416_s20 }
 0x137   :  { %s165_s17 = sshll.u32 %s3586_s16, 4  ;;  %p2421_p4 = por %p2420_p3, %p2419_p2  ;;  %s166_s17 = int_to_ptr.hbm [resolvable:$true] %s165_s17 }
 0x139   :  { %p2422_p5 = pnand %p2421_p4, %p2417_p1 }
 0x13b   :  { %2425 = shalt.err (!%p2422_p5)
}
 0x13c   :  { %s3587_s19 = sld [smem:[#allocation84_spill]]  ;;  %s2950_s29 = smov [#allocation6]  }
 0x13d   :  { %146 = dma.hbm_to_vmem [thread:$0]  %s3319_s25, 1024, %s141_s27, [#allocation3], %s2935_s14, %s2935_s14, %s2936_s28  }
 0x13e   :  { %s167_s26 = sshll.u32 %s2950_s29, 4  ;;  %s2438_s6 = sshra.s32 %s166_s17, 4  ;;  %s168_s26 = int_to_ptr.vmem [resolvable:$true] %s167_s26  ;;  %s2439_s6 = int_to_ptr.hbm [resolvable:$true] %s2438_s6 }
 0x13f   :  { %s2440_s0 = scalar_lea.hbm %s2439_s6, 1  ;;  %s2442_s21 = scalar_lea.hbm %s3586_s16, 1 }
 0x140   :  { %p2441_p6 = scmp.ne.s32.totalorder %s2439_s6, %s2440_s0  ;;  %p2443_p7 = scmp.lt.s32.totalorder %s2439_s6, %s3586_s16 }
 0x141   :  { %p2444_p8 = scmp.lt.s32.totalorder %s2442_s21, %s2440_s0 }
 0x142   :  { %s189_s23 = sshll.u32 %s3587_s19, 4  ;;  %s190_s23 = int_to_ptr.hbm [resolvable:$true] %s189_s23 }
 0x143   :  { %p2445_p9 = por %p2444_p8, %p2443_p7 }
 0x145   :  { %p2446_p10 = pnand %p2445_p9, %p2441_p6 }
 0x147   :  { %2449 = shalt.err (!%p2446_p10)
}
 0x148   :  { %170 = dma.hbm_to_vmem [thread:$0]  %s166_s17, 16, %s168_s26, [#allocation5]  }
 0x149   :  { %s3588_s4 = sld [smem:[#allocation86_spill]]  ;;  %s2951_s1 = smov [#allocation9]  }
 0x14a   :  { %s191_s13 = sshll.u32 %s2951_s1, 4  ;;  %s2462_s10 = sshra.s32 %s190_s23, 4  ;;  %s192_s13 = int_to_ptr.vmem [resolvable:$true] %s191_s13  ;;  %s2463_s10 = int_to_ptr.hbm [resolvable:$true] %s2462_s10 }
 0x14b   :  { %s2464_s24 = scalar_lea.hbm %s2463_s10, 1  ;;  %s2466_s25 = scalar_lea.hbm %s3587_s19, 1 }
 0x14c   :  { %p2465_p11 = scmp.ne.s32.totalorder %s2463_s10, %s2464_s24  ;;  %p2467_p12 = scmp.lt.s32.totalorder %s2463_s10, %s3587_s19 }
 0x14d   :  { %p2468_p13 = scmp.lt.s32.totalorder %s2466_s25, %s2464_s24 }
 0x14f   :  { %s213_s7 = sshll.u32 %s3588_s4, 4  ;;  %p2469_p0 = por %p2468_p13, %p2467_p12  ;;  %s214_s7 = int_to_ptr.hbm [resolvable:$true] %s213_s7 }
 0x151   :  { %p2470_p1 = pnand %p2469_p0, %p2465_p11 }
 0x153   :  { %2473 = shalt.err (!%p2470_p1)
}
 0x154   :  { %194 = dma.hbm_to_vmem [thread:$0]  %s190_s23, 16, %s192_s13, [#allocation8]  }
 0x155   :  { %s3589_s30 = sld [smem:[#allocation87_spill]]  ;;  %s2952_s9 = smov [#allocation12]  }
 0x156   :  { %s215_s11 = sshll.u32 %s2952_s9, 4  ;;  %s2486_s15 = sshra.s32 %s214_s7, 4  ;;  %s216_s11 = int_to_ptr.vmem [resolvable:$true] %s215_s11  ;;  %s2487_s15 = int_to_ptr.hbm [resolvable:$true] %s2486_s15 }
 0x157   :  { %s2488_s16 = scalar_lea.hbm %s2487_s15, 1  ;;  %s2490_s12 = scalar_lea.hbm %s3588_s4, 1 }
 0x158   :  { %p2489_p2 = scmp.ne.s32.totalorder %s2487_s15, %s2488_s16  ;;  %p2491_p3 = scmp.lt.s32.totalorder %s2487_s15, %s3588_s4 }
 0x159   :  { %p2492_p4 = scmp.lt.s32.totalorder %s2490_s12, %s2488_s16 }
 0x15b   :  { %s235_s2 = sshll.u32 %s3589_s30, 4  ;;  %p2493_p5 = por %p2492_p4, %p2491_p3  ;;  %s236_s2 = int_to_ptr.hbm [resolvable:$true] %s235_s2 }
 0x15d   :  { %p2494_p6 = pnand %p2493_p5, %p2489_p2 }
 0x15f   :  { %2497 = shalt.err (!%p2494_p6)
}
 0x160   :  { %218 = dma.hbm_to_vmem [thread:$0]  %s214_s7, 16, %s216_s11, [#allocation11]  }
 0x161   :  { %s3590_s27 = sld [smem:[#allocation89_spill]]  ;;  %s2953_s17 = smov [#allocation15]  }
 0x162   :  { %s237_s18 = sshll.u32 %s2953_s17, 4  ;;  %s2510_s22 = sshra.s32 %s236_s2, 4  ;;  %s238_s18 = int_to_ptr.vmem [resolvable:$true] %s237_s18  ;;  %s2511_s22 = int_to_ptr.hbm [resolvable:$true] %s2510_s22 }
 0x163   :  { %s2512_s19 = scalar_lea.hbm %s2511_s22, 1  ;;  %s2514_s23 = scalar_lea.hbm %s3589_s30, 1 }
 0x164   :  { %p2513_p7 = scmp.ne.s32.totalorder %s2511_s22, %s2512_s19  ;;  %p2515_p8 = scmp.lt.s32.totalorder %s2511_s22, %s3589_s30 }
 0x165   :  { %p2516_p9 = scmp.lt.s32.totalorder %s2514_s23, %s2512_s19 }
 0x167   :  { %s260_s20 = sshll.u32 %s3590_s27, 4  ;;  %p2517_p10 = por %p2516_p9, %p2515_p8  ;;  %s3341_s20 = int_to_ptr.hbm [resolvable:$true] %s260_s20 }
 0x169   :  { %p2518_p11 = pnand %p2517_p10, %p2513_p7 }
 0x16b   :  { %2521 = shalt.err (!%p2518_p11)
}
 0x16c   :  { %240 = dma.hbm_to_vmem [thread:$0]  %s236_s2, 16, %s238_s18, [#allocation14]  }
 0x16d   :  { %s3591_s29 = sld [smem:[#allocation91_spill]]  ;;  %s2954_s6 = smov [#allocation18]  }
 0x16e   :  { %s262_s0 = sshll.u32 %s2954_s6, 4  ;;  %s2534_s21 = sshra.s32 %s3341_s20, 4  ;;  %s263_s0 = int_to_ptr.vmem [resolvable:$true] %s262_s0  ;;  %s2535_s21 = int_to_ptr.hbm [resolvable:$true] %s2534_s21 }
 0x16f   :  { %s2536_s4 = scalar_lea.hbm %s2535_s21, 16  ;;  %s2538_s1 = scalar_lea.hbm %s3590_s27, 16 }
 0x170   :  { %p2537_p12 = scmp.ne.s32.totalorder %s2535_s21, %s2536_s4  ;;  %p2539_p13 = scmp.lt.s32.totalorder %s2535_s21, %s3590_s27 }
 0x171   :  { %p2540_p0 = scmp.lt.s32.totalorder %s2538_s1, %s2536_s4 }
 0x173   :  { %s287_s26 = sshll.u32 %s3591_s29, 4  ;;  %p2541_p1 = por %p2540_p0, %p2539_p13  ;;  %s288_s26 = int_to_ptr.hbm [resolvable:$true] %s287_s26 }
 0x175   :  { %p2542_p2 = pnand %p2541_p1, %p2537_p12 }
 0x177   :  { %2545 = shalt.err (!%p2542_p2)
}
 0x178   :  { %s3592_s13 = sld [smem:[#allocation92_spill]]  ;;  %s2955_s7 = smov [#allocation21]  }
 0x179   :  { %268 = dma.hbm_to_vmem [thread:$0]  %s3341_s20, 256, %s263_s0, [#allocation17], %s2935_s14, %s2935_s14, %s2936_s28  }
 0x17a   :  { %s289_s10 = sshll.u32 %s2955_s7, 4  ;;  %s2558_s25 = sshra.s32 %s288_s26, 4  ;;  %s290_s10 = int_to_ptr.vmem [resolvable:$true] %s289_s10  ;;  %s2559_s25 = int_to_ptr.hbm [resolvable:$true] %s2558_s25 }
 0x17b   :  { %s2560_s30 = scalar_lea.hbm %s2559_s25, 1  ;;  %s2562_s2 = scalar_lea.hbm %s3591_s29, 1 }
 0x17c   :  { %p2561_p3 = scmp.ne.s32.totalorder %s2559_s25, %s2560_s30  ;;  %p2563_p4 = scmp.lt.s32.totalorder %s2559_s25, %s3591_s29 }
 0x17d   :  { %p2564_p5 = scmp.lt.s32.totalorder %s2562_s2, %s2560_s30 }
 0x17e   :  { %s310_s24 = sshll.u32 %s3592_s13, 4  ;;  %s3354_s24 = int_to_ptr.hbm [resolvable:$true] %s310_s24 }
 0x17f   :  { %p2565_p6 = por %p2564_p5, %p2563_p4 }
 0x181   :  { %p2566_p7 = pnand %p2565_p6, %p2561_p3 }
 0x183   :  { %2569 = shalt.err (!%p2566_p7)
}
 0x184   :  { %292 = dma.hbm_to_vmem [thread:$0]  %s288_s26, 16, %s290_s10, [#allocation20]  }
 0x185   :  { %s3593_s9 = sld [smem:[#allocation93_spill]]  ;;  %s2956_s15 = smov [#allocation24]  }
 0x186   :  { %s312_s16 = sshll.u32 %s2956_s15, 4  ;;  %s2582_s12 = sshra.s32 %s3354_s24, 4  ;;  %s313_s16 = int_to_ptr.vmem [resolvable:$true] %s312_s16  ;;  %s2583_s12 = int_to_ptr.hbm [resolvable:$true] %s2582_s12 }
 0x187   :  { %s2584_s27 = scalar_lea.hbm %s2583_s12, 64  ;;  %s2586_s17 = scalar_lea.hbm %s3592_s13, 64 }
 0x188   :  { %p2585_p8 = scmp.ne.s32.totalorder %s2583_s12, %s2584_s27  ;;  %p2587_p9 = scmp.lt.s32.totalorder %s2583_s12, %s3592_s13 }
 0x189   :  { %p2588_p10 = scmp.lt.s32.totalorder %s2586_s17, %s2584_s27 }
 0x18b   :  { %s337_s11 = sshll.u32 %s3593_s9, 4  ;;  %p2589_p11 = por %p2588_p10, %p2587_p9  ;;  %s338_s11 = int_to_ptr.hbm [resolvable:$true] %s337_s11 }
 0x18d   :  { %p2590_p12 = pnand %p2589_p11, %p2585_p8 }
 0x18f   :  { %2593 = shalt.err (!%p2590_p12)
}
 0x190   :  { %s3594_s18 = sld [smem:[#allocation94_spill]]  ;;  %s2957_s20 = smov [#allocation27]  }
 0x191   :  { %318 = dma.hbm_to_vmem [thread:$0]  %s3354_s24, 1024, %s313_s16, [#allocation23], %s2935_s14, %s2935_s14, %s2936_s28  }
 0x192   :  { %s339_s22 = sshll.u32 %s2957_s20, 4  ;;  %s2606_s23 = sshra.s32 %s338_s11, 4  ;;  %s340_s22 = int_to_ptr.vmem [resolvable:$true] %s339_s22  ;;  %s2607_s23 = int_to_ptr.hbm [resolvable:$true] %s2606_s23 }
 0x193   :  { %s2608_s29 = scalar_lea.hbm %s2607_s23, 1  ;;  %s2610_s26 = scalar_lea.hbm %s3593_s9, 1 }
 0x194   :  { %p2609_p13 = scmp.ne.s32.totalorder %s2607_s23, %s2608_s29  ;;  %p2611_p0 = scmp.lt.s32.totalorder %s2607_s23, %s3593_s9 }
 0x195   :  { %p2612_p1 = scmp.lt.s32.totalorder %s2610_s26, %s2608_s29 }
 0x196   :  { %s359_s19 = sshll.u32 %s3594_s18, 4  ;;  %s360_s19 = int_to_ptr.hbm [resolvable:$true] %s359_s19 }
 0x197   :  { %p2613_p2 = por %p2612_p1, %p2611_p0 }
 0x199   :  { %p2614_p3 = pnand %p2613_p2, %p2609_p13 }
 0x19b   :  { %2617 = shalt.err (!%p2614_p3)
}
 0x19c   :  { %342 = dma.hbm_to_vmem [thread:$0]  %s338_s11, 16, %s340_s22, [#allocation26]  }
 0x19d   :  { %s3595_s6 = sld [smem:[#allocation95_spill]]  ;;  %s2958_s21 = smov [#allocation30]  }
 0x19e   :  { %s361_s4 = sshll.u32 %s2958_s21, 4  ;;  %s2630_s1 = sshra.s32 %s360_s19, 4  ;;  %s362_s4 = int_to_ptr.vmem [resolvable:$true] %s361_s4  ;;  %s2631_s1 = int_to_ptr.hbm [resolvable:$true] %s2630_s1 }
 0x19f   :  { %s2632_s13 = scalar_lea.hbm %s2631_s1, 1  ;;  %s2634_s7 = scalar_lea.hbm %s3594_s18, 1 }
 0x1a0   :  { %p2633_p4 = scmp.ne.s32.totalorder %s2631_s1, %s2632_s13  ;;  %p2635_p5 = scmp.lt.s32.totalorder %s2631_s1, %s3594_s18 }
 0x1a1   :  { %p2636_p6 = scmp.lt.s32.totalorder %s2634_s7, %s2632_s13 }
 0x1a3   :  { %s382_s0 = sshll.u32 %s3595_s6, 4  ;;  %p2637_p7 = por %p2636_p6, %p2635_p5  ;;  %s3370_s0 = int_to_ptr.hbm [resolvable:$true] %s382_s0 }
 0x1a5   :  { %p2638_p8 = pnand %p2637_p7, %p2633_p4 }
 0x1a7   :  { %2641 = shalt.err (!%p2638_p8)
}
 0x1a8   :  { %364 = dma.hbm_to_vmem [thread:$0]  %s360_s19, 16, %s362_s4, [#allocation29]  }
 0x1a9   :  { %s3596_s10 = sld [smem:[#allocation96_spill]]  ;;  %s2959_s24 = smov [#allocation33]  }
 0x1aa   :  { %s384_s25 = sshll.u32 %s2959_s24, 4  ;;  %s2654_s2 = sshra.s32 %s3370_s0, 4  ;;  %s385_s25 = int_to_ptr.vmem [resolvable:$true] %s384_s25  ;;  %s2655_s2 = int_to_ptr.hbm [resolvable:$true] %s2654_s2 }
 0x1ab   :  { %s2656_s9 = scalar_lea.hbm %s2655_s2, 64  ;;  %s2658_s11 = scalar_lea.hbm %s3595_s6, 64 }
 0x1ac   :  { %p2657_p9 = scmp.ne.s32.totalorder %s2655_s2, %s2656_s9  ;;  %p2659_p10 = scmp.lt.s32.totalorder %s2655_s2, %s3595_s6 }
 0x1ad   :  { %p2660_p11 = scmp.lt.s32.totalorder %s2658_s11, %s2656_s9 }
 0x1af   :  { %s409_s30 = sshll.u32 %s3596_s10, 4  ;;  %p2661_p12 = por %p2660_p11, %p2659_p10  ;;  %s410_s30 = int_to_ptr.hbm [resolvable:$true] %s409_s30 }
 0x1b1   :  { %p2662_p13 = pnand %p2661_p12, %p2657_p9 }
 0x1b3   :  { %2665 = shalt.err (!%p2662_p13)
}
 0x1b4   :  { %s3597_s15 = sld [smem:[#allocation97_spill]]  ;;  %s2960_s12 = smov [#allocation36]  }
 0x1b5   :  { %390 = dma.hbm_to_vmem [thread:$0]  %s3370_s0, 1024, %s385_s25, [#allocation32], %s2935_s14, %s2935_s14, %s2936_s28  }
 0x1b6   :  { %s411_s27 = sshll.u32 %s2960_s12, 4  ;;  %s2678_s17 = sshra.s32 %s410_s30, 4  ;;  %s412_s27 = int_to_ptr.vmem [resolvable:$true] %s411_s27  ;;  %s2679_s17 = int_to_ptr.hbm [resolvable:$true] %s2678_s17 }
 0x1b7   :  { %s2680_s18 = scalar_lea.hbm %s2679_s17, 1  ;;  %s2682_s20 = scalar_lea.hbm %s3596_s10, 1 }
 0x1b8   :  { %p2681_p0 = scmp.ne.s32.totalorder %s2679_s17, %s2680_s18  ;;  %p2683_p1 = scmp.lt.s32.totalorder %s2679_s17, %s3596_s10 }
 0x1b9   :  { %p2684_p2 = scmp.lt.s32.totalorder %s2682_s20, %s2680_s18 }
 0x1ba   :  { %s431_s16 = sshll.u32 %s3597_s15, 4  ;;  %s432_s16 = int_to_ptr.hbm [resolvable:$true] %s431_s16 }
 0x1bb   :  { %p2685_p3 = por %p2684_p2, %p2683_p1 }
 0x1bd   :  { %p2686_p4 = pnand %p2685_p3, %p2681_p0 }
 0x1bf   :  { %2689 = shalt.err (!%p2686_p4)
}
 0x1c0   :  { %414 = dma.hbm_to_vmem [thread:$0]  %s410_s30, 16, %s412_s27, [#allocation35]  }
 0x1c1   :  { %s3598_s22 = sld [smem:[#allocation98_spill]]  ;;  %s2961_s19 = smov [#allocation39]  }
 0x1c2   :  { %s433_s23 = sshll.u32 %s2961_s19, 4  ;;  %s2702_s26 = sshra.s32 %s432_s16, 4  ;;  %s434_s23 = int_to_ptr.vmem [resolvable:$true] %s433_s23  ;;  %s2703_s26 = int_to_ptr.hbm [resolvable:$true] %s2702_s26 }
 0x1c3   :  { %s2704_s6 = scalar_lea.hbm %s2703_s26, 1  ;;  %s2706_s0 = scalar_lea.hbm %s3597_s15, 1 }
 0x1c4   :  { %p2705_p5 = scmp.ne.s32.totalorder %s2703_s26, %s2704_s6  ;;  %p2707_p6 = scmp.lt.s32.totalorder %s2703_s26, %s3597_s15 }
 0x1c5   :  { %p2708_p7 = scmp.lt.s32.totalorder %s2706_s0, %s2704_s6 }
 0x1c7   :  { %s455_s29 = sshll.u32 %s3598_s22, 4  ;;  %p2709_p8 = por %p2708_p7, %p2707_p6  ;;  %s456_s29 = int_to_ptr.hbm [resolvable:$true] %s455_s29 }
 0x1c9   :  { %p2710_p9 = pnand %p2709_p8, %p2705_p5 }
 0x1cb   :  { %2713 = shalt.err (!%p2710_p9)
}
 0x1cc   :  { %436 = dma.hbm_to_vmem [thread:$0]  %s432_s16, 16, %s434_s23, [#allocation38]  }
 0x1cd   :  { %s3599_s21 = sld [smem:[#allocation99_spill]]  ;;  %s2962_s1 = smov [#allocation42]  }
 0x1ce   :  { %s457_s13 = sshll.u32 %s2962_s1, 4  ;;  %s2726_s7 = sshra.s32 %s456_s29, 4  ;;  %s458_s13 = int_to_ptr.vmem [resolvable:$true] %s457_s13  ;;  %s2727_s7 = int_to_ptr.hbm [resolvable:$true] %s2726_s7 }
 0x1cf   :  { %s2728_s10 = scalar_lea.hbm %s2727_s7, 1  ;;  %s2730_s24 = scalar_lea.hbm %s3598_s22, 1 }
 0x1d0   :  { %p2729_p10 = scmp.ne.s32.totalorder %s2727_s7, %s2728_s10  ;;  %p2731_p11 = scmp.lt.s32.totalorder %s2727_s7, %s3598_s22 }
 0x1d1   :  { %p2732_p12 = scmp.lt.s32.totalorder %s2730_s24, %s2728_s10 }
 0x1d3   :  { %s479_s4 = sshll.u32 %s3599_s21, 4  ;;  %p2733_p13 = por %p2732_p12, %p2731_p11  ;;  %s480_s4 = int_to_ptr.hbm [resolvable:$true] %s479_s4 }
 0x1d5   :  { %p2734_p0 = pnand %p2733_p13, %p2729_p10 }
 0x1d7   :  { %2737 = shalt.err (!%p2734_p0)
}
 0x1d8   :  { %460 = dma.hbm_to_vmem [thread:$0]  %s456_s29, 16, %s458_s13, [#allocation41]  }
 0x1d9   :  { %s3600_s25 = sld [smem:[#allocation101_spill]]  ;;  %s2963_s30 = smov [#allocation45]  }
 0x1da   :  { %s481_s2 = sshll.u32 %s2963_s30, 4  ;;  %s2750_s11 = sshra.s32 %s480_s4, 4  ;;  %s482_s2 = int_to_ptr.vmem [resolvable:$true] %s481_s2  ;;  %s2751_s11 = int_to_ptr.hbm [resolvable:$true] %s2750_s11 }
 0x1db   :  { %s2752_s15 = scalar_lea.hbm %s2751_s11, 1  ;;  %s2754_s16 = scalar_lea.hbm %s3599_s21, 1 }
 0x1dc   :  { %p2753_p1 = scmp.ne.s32.totalorder %s2751_s11, %s2752_s15  ;;  %p2755_p2 = scmp.lt.s32.totalorder %s2751_s11, %s3599_s21 }
 0x1dd   :  { %p2756_p3 = scmp.lt.s32.totalorder %s2754_s16, %s2752_s15 }
 0x1df   :  { %s502_s9 = sshll.u32 %s3600_s25, 4  ;;  %p2757_p4 = por %p2756_p3, %p2755_p2  ;;  %s3392_s9 = int_to_ptr.hbm [resolvable:$true] %s502_s9 }
 0x1e1   :  { %p2758_p5 = pnand %p2757_p4, %p2753_p1 }
 0x1e3   :  { %2761 = shalt.err (!%p2758_p5)
}
 0x1e4   :  { %484 = dma.hbm_to_vmem [thread:$0]  %s480_s4, 16, %s482_s2, [#allocation44]  }
 0x1e5   :  { %s3601_s12 = sld [smem:[#allocation103_spill]]  ;;  %s2964_s17 = smov [#allocation48]  }
 0x1e6   :  { %s504_s18 = sshll.u32 %s2964_s17, 4  ;;  %s2774_s20 = sshra.s32 %s3392_s9, 4  ;;  %s505_s18 = int_to_ptr.vmem [resolvable:$true] %s504_s18  ;;  %s2775_s20 = int_to_ptr.hbm [resolvable:$true] %s2774_s20 }
 0x1e7   :  { %s2776_s22 = scalar_lea.hbm %s2775_s20, 64  ;;  %s2778_s19 = scalar_lea.hbm %s3600_s25, 64 }
 0x1e8   :  { %p2777_p6 = scmp.ne.s32.totalorder %s2775_s20, %s2776_s22  ;;  %p2779_p7 = scmp.lt.s32.totalorder %s2775_s20, %s3600_s25 }
 0x1e9   :  { %p2780_p8 = scmp.lt.s32.totalorder %s2778_s19, %s2776_s22 }
 0x1eb   :  { %s526_s27 = sshll.u32 %s3601_s12, 4  ;;  %p2781_p9 = por %p2780_p8, %p2779_p7  ;;  %s3397_s27 = int_to_ptr.hbm [resolvable:$true] %s526_s27 }
 0x1ed   :  { %p2782_p10 = pnand %p2781_p9, %p2777_p6 }
 0x1ef   :  { %2785 = shalt.err (!%p2782_p10)
}
 0x1f0   :  { %510 = dma.hbm_to_vmem [thread:$0]  %s3392_s9, 1024, %s505_s18, [#allocation47], %s2935_s14, %s2935_s14, %s2936_s28  }
 0x1f1   :  { %s2965_s23 = smov [#allocation51]   ;;  %s553_s26 = sshll.u32 %s3210_s3, 4  ;;  %s554_s26 = int_to_ptr.hbm [resolvable:$true] %s553_s26 }
 0x1f2   :  { %s528_s29 = sshll.u32 %s2965_s23, 4  ;;  %s2798_s6 = sshra.s32 %s3397_s27, 4  ;;  %s529_s29 = int_to_ptr.vmem [resolvable:$true] %s528_s29  ;;  %s2799_s6 = int_to_ptr.hbm [resolvable:$true] %s2798_s6 }
 0x1f3   :  { %s2800_s0 = scalar_lea.hbm %s2799_s6, 64  ;;  %s2802_s21 = scalar_lea.hbm %s3601_s12, 64 }
 0x1f4   :  { %p2801_p11 = scmp.ne.s32.totalorder %s2799_s6, %s2800_s0  ;;  %p2803_p12 = scmp.lt.s32.totalorder %s2799_s6, %s3601_s12 }
 0x1f5   :  { %p2804_p13 = scmp.lt.s32.totalorder %s2802_s21, %s2800_s0 }
 0x1f7   :  { %p2805_p0 = por %p2804_p13, %p2803_p12 }
 0x1f9   :  { %p2806_p1 = pnand %p2805_p0, %p2801_p11 }
 0x1fb   :  { %2809 = shalt.err (!%p2806_p1)
}
 0x1fc   :  { %534 = dma.hbm_to_vmem [thread:$0]  %s3397_s27, 1024, %s529_s29, [#allocation50], %s2935_s14, %s2935_s14, %s2936_s28  }
 0x1fd   :  { %s2966_s4 = smov [#allocation54]   ;;  %s2822_s13 = sshra.s32 %s554_s26, 4  ;;  %s2823_s13 = int_to_ptr.hbm [resolvable:$true] %s2822_s13 }
 0x1fe   :  { %s555_s1 = sshll.u32 %s2966_s4, 4  ;;  %s2824_s7 = scalar_lea.hbm %s2823_s13, 1  ;;  %s556_s1 = int_to_ptr.vmem [resolvable:$true] %s555_s1 }
 0x1ff   :  { %p2825_p2 = scmp.ne.s32.totalorder %s2823_s13, %s2824_s7  ;;  %s2826_s10 = scalar_lea.hbm %s3210_s3, 1 }
 0x200   :  { %p2827_p3 = scmp.lt.s32.totalorder %s2823_s13, %s3210_s3  ;;  %p2828_p4 = scmp.lt.s32.totalorder %s2826_s10, %s2824_s7 }
 0x202   :  { %p2829_p5 = por %p2828_p4, %p2827_p3 }
 0x204   :  { %p2830_p6 = pnand %p2829_p5, %p2825_p2 }
 0x206   :  { %2833 = shalt.err (!%p2830_p6)
}
 0x207   :  { %558 = dma.hbm_to_vmem [thread:$0]  %s554_s26, 16, %s556_s1, [#allocation53]  }
 0x208   :  { %2846 = dma.done.wait [#allocation3], 1024  }
 0x209   :  { %2847 = vsyncadd [#allocation3], 4294966272 }
 0x20a   :  { %2848 = dma.done.wait [#allocation5], 32  }
 0x20b   :  { %2849 = vsyncadd [#allocation5], 4294967264 }
 0x20c   :  { %2850 = dma.done.wait [#allocation8], 32  }
 0x20d   :  { %2851 = vsyncadd [#allocation8], 4294967264 }
 0x20e   :  { %2852 = dma.done.wait [#allocation11], 32  }
 0x20f   :  { %2853 = vsyncadd [#allocation11], 4294967264 }
 0x210   :  { %2854 = dma.done.wait [#allocation14], 32  }
 0x211   :  { %2855 = vsyncadd [#allocation14], 4294967264 }
 0x212   :  { %2856 = dma.done.wait [#allocation17], 512  }
 0x213   :  { %2857 = vsyncadd [#allocation17], 4294966784 }
 0x214   :  { %2858 = dma.done.wait [#allocation20], 32  }
 0x215   :  { %2859 = vsyncadd [#allocation20], 4294967264 }
 0x216   :  { %2860 = dma.done.wait [#allocation23], 2048  }
 0x217   :  { %2861 = vsyncadd [#allocation23], 4294965248 }
 0x218   :  { %2862 = dma.done.wait [#allocation26], 1040  }
 0x219   :  { %2863 = vsyncadd [#allocation26], 4294966256 }
 0x21a   :  { %2864 = dma.done.wait [#allocation29], 32  }
 0x21b   :  { %2865 = vsyncadd [#allocation29], 4294967264 }
 0x21c   :  { %2866 = dma.done.wait [#allocation32], 2048  }
 0x21d   :  { %2867 = vsyncadd [#allocation32], 4294965248 }
 0x21e   :  { %2868 = dma.done.wait [#allocation35], 1040  }
 0x21f   :  { %2869 = vsyncadd [#allocation35], 4294966256 }
 0x220   :  { %2870 = dma.done.wait [#allocation38], 32  }
 0x221   :  { %2871 = vsyncadd [#allocation38], 4294967264 }
 0x222   :  { %2872 = dma.done.wait [#allocation41], 1040  }
 0x223   :  { %2873 = vsyncadd [#allocation41], 4294966256 }
 0x224   :  { %2874 = dma.done.wait [#allocation44], 1040  }
 0x225   :  { %2875 = vsyncadd [#allocation44], 4294966256 }
 0x226   :  { %2876 = dma.done.wait [#allocation47], 2048  }
 0x227   :  { %2877 = vsyncadd [#allocation47], 4294965248 }
 0x228   :  { %2878 = dma.done.wait [#allocation50], 1040  }
 0x229   :  { %2879 = vsyncadd [#allocation50], 4294966256 }
 0x22a   :  { %2880 = dma.done.wait [#allocation53], 32  }
 0x22b   :  { %2881 = vsyncadd [#allocation53], 4294967264  ;;  %s3602_s3 = sld [smem:[#allocation76_spill]]  ;;  %vm710_vm0 = vcmask 1044480   ;;  %vm706_vm1 = vcmask 105472   ;;  %v785_v11 = vld [vmem:[#allocation2 + $0x38] sm:$0xff] }
 0x22c   :  { %s3603_s14 = sld [smem:[#allocation73_spill]]  ;;  %v784_v12 = vld [vmem:[#allocation2 + $0x30] sm:$0xff]  ;;  %797 = vmatpush.msra.mxu2 %v785_v11  ;;  %v783_v13 = vld [vmem:[#allocation2 + $0x28] sm:$0xff]  ;;  %v782_v14 = vld [vmem:[#allocation2 + $0x20] sm:$0xff]  ;;  %vm749_vm3 = vcmask 523264   ;;  %vm843_vm7 = vcmask 64512  }
 0x22d   :  { %s3604_s28 = sld [smem:[#allocation78_spill]]  ;;  %v781_v15 = vld [vmem:[#allocation2 + $0x18] sm:$0xff]  ;;  %v780_v21 = vld [vmem:[#allocation2 + $0x10] sm:$0xff]  ;;  %v779_v22 = vld [vmem:[#allocation2 + $0x8] sm:$0xff]  ;;  %vm1125_vm12 = vcmask 1043456   ;;  %vm1121_vm13 = vcmask 97280  }
 0x22e   :  { %s3605_s24 = sld [smem:[#allocation77_spill]]  ;;  %798 = vmatpush.msra.mxu2 %v784_v12  ;;  %v778_v23 = vld [vmem:[#allocation2] sm:$0xff] }
 0x22f   :  { %s3606_s25 = sld [smem:[#allocation79_spill]]  ;;  %v1938_v29 = vld [vmem:[#allocation4] ss:$0 sm:$0xff] }
 0x230   :  { %799 = vmatpush.msra.mxu2 %v783_v13  ;;  %s3607_s30 = sld [smem:[#allocation81_spill]] }
 0x231   :  { %v701_v0 = vld [vmem:[%s3602_s3 + $0x8] sm:$0x1f]  ;;  %v700_v1 = vld [vmem:[%s3602_s3] sm:$0xff]  ;;  %s3608_s2 = sld [smem:[#allocation75_spill]] }
 0x232   :  { %1818 = vmatpush.msk.msra.mxu0 %vm710_vm0, %v701_v0  ;;  %v699_v2 = vld [vmem:[%s3603_s14] sm:$0xff]  ;;  %800 = vmatpush.msra.mxu2 %v782_v14  ;;  %s3609_s9 = sld [smem:[#allocation83_spill]] }
 0x233   :  { %v744_v3 = vld [vmem:[%s3604_s28 + $0x38] sm:$0xff]  ;;  %v743_v4 = vld [vmem:[%s3604_s28 + $0x30] sm:$0xff]  ;;  %v742_v5 = vld [vmem:[%s3604_s28 + $0x28] sm:$0xff]  ;;  %s3610_s11 = sld [smem:[#allocation85_spill]] }
 0x234   :  { %761 = vmatpush.msra.mxu1 %v744_v3  ;;  %729 = vmatpush.msra.mxu0 %v700_v1  ;;  %v741_v6 = vld [vmem:[%s3604_s28 + $0x20] sm:$0xff]  ;;  %v740_v7 = vld [vmem:[%s3604_s28 + $0x18] sm:$0xff]  ;;  %v739_v8 = vld [vmem:[%s3604_s28 + $0x10] sm:$0xff]  ;;  %s3611_s15 = sld [smem:[#allocation88_spill]] }
 0x235   :  { %1819 = vmatmul.msk.f32.vlgmr.msra.gmra.mxu0 %vm706_vm1, %v699_v2  ;;  %v738_v9 = vld [vmem:[%s3604_s28 + $0x8] sm:$0xff]  ;;  %v737_v10 = vld [vmem:[%s3604_s28] sm:$0xff]  ;;  %801 = vmatpush.msra.mxu2 %v781_v15  ;;  %s3612_s16 = sld [smem:[#allocation74_spill]] }
 0x236   :  { %762 = vmatpush.msra.mxu1 %v743_v4  ;;  %v1936_v16 = vld [vmem:[%s3605_s24] ss:$0 sm:$0xff]  ;;  %v1939_v2 = vld [vmem:[#allocation6] ss:$0 sm:$0xff]  ;;  %s3613_s12 = sld [smem:[#allocation90_spill]] }
 0x237   :  { %802 = vmatpush.msra.mxu2 %v780_v21  ;;  %v1937_v24 = vld [vmem:[%s3606_s25] ss:$0 sm:$0xff] }
 0x238   :  { %763 = vmatpush.msra.mxu1 %v742_v5  ;;  %v816_v32 = vld [vmem:[%s3607_s30] sm:$0x1]  ;;  %v900_v47 = vld [vmem:[%s3609_s9 + $0x78] sm:$0xff]  ;;  %v899_v48 = vld [vmem:[%s3609_s9 + $0x70] sm:$0xff] }
 0x239   :  { %803 = vmatpush.msra.mxu2 %v779_v22  ;;  %v3433_v36 = vld [vmem:[%s3608_s2] sm:$0xff]  ;;  %v898_v49 = vld [vmem:[%s3609_s9 + $0x68] sm:$0xff]  ;;  %v896_v51 = vld [vmem:[%s3609_s9 + $0x58] sm:$0xff] }
 0x23a   :  { %764 = vmatpush.msra.mxu1 %v741_v6  ;;  %vm777_vm5 = vcmp.gt.f32.partialorder %v3433_v36, 0.0  ;;  %v897_v50 = vld [vmem:[%s3609_s9 + $0x60] sm:$0xff]  ;;  %v895_v52 = vld [vmem:[%s3609_s9 + $0x50] sm:$0xff]  ;;  %v894_v53 = vld [vmem:[%s3609_s9 + $0x48] sm:$0xff] }
 0x23b   :  { %804 = vmatpush.msra.mxu2 %v778_v23  ;;  %v893_v54 = vld [vmem:[%s3609_s9 + $0x40] sm:$0xff]  ;;  %v892_v55 = vld [vmem:[%s3609_s9 + $0x38] sm:$0xff]  ;;  %v891_v56 = vld [vmem:[%s3609_s9 + $0x30] sm:$0xff] }
 0x23c   :  { %765 = vmatpush.msra.mxu1 %v740_v7  ;;  %v890_v57 = vld [vmem:[%s3609_s9 + $0x28] sm:$0xff]  ;;  %v889_v58 = vld [vmem:[%s3609_s9 + $0x20] sm:$0xff]  ;;  %v888_v60 = vld [vmem:[%s3609_s9 + $0x18] sm:$0xff] }
 0x23d   :  { %v887_v63 = vld [vmem:[%s3609_s9 + $0x10] sm:$0xff]  ;;  %v886_v0 = vld [vmem:[%s3609_s9 + $0x8] sm:$0xff]  ;;  %v885_v1 = vld [vmem:[%s3609_s9] sm:$0xff] }
 0x23e   :  { %766 = vmatpush.msra.mxu1 %v739_v8  ;;  %v1940_v7 = vld [vmem:[#allocation9] ss:$0 sm:$0xff] }
 0x240   :  { %767 = vmatpush.msra.mxu1 %v738_v9 }
 0x242   :  { %768 = vmatpush.msra.mxu1 %v737_v10  ;;  %v928_v10 = vld [vmem:[#allocation7] sm:$0x1] }
 0x2b2   :  { %v731_v17 = vpop.f32.mrf.mxu0 }
 0x2b3   :  { %v732_v18 = vadd.f32 %v1936_v16, %v731_v17 }
 0x2b5   :  { %v735_v19 = vmul.f32 0.01, %v732_v18  ;;  %vm734_vm2 = vcmp.gt.f32.partialorder %v732_v18, 0.0 }
 0x2b7   :  { %v736_v20 = vsel %vm734_vm2, %v732_v18, %v735_v19 }
 0x2b8   :  { %1820 = vmatmul.msk.f32.vlgmr.msra.gmra.mxu1 %vm749_vm3, %v736_v20 }
 0x335   :  { %v770_v25 = vpop.f32.mrf.mxu1 }
 0x336   :  { %v771_v26 = vadd.f32 %v1937_v24, %v770_v25  ;;  %v1011_v24 = vld [vmem:[%s3610_s11 + $0x78] sm:$0xff]  ;;  %v1010_v25 = vld [vmem:[%s3610_s11 + $0x70] sm:$0xff] }
 0x337   :  { %1012 = vmatpush.msrb.mxu2 %v1011_v24  ;;  %v1255_v24 = vld [vmem:[#allocation22 + $0x30] sm:$0xff] }
 0x338   :  { %v774_v27 = vmul.f32 0.01, %v771_v26  ;;  %vm773_vm4 = vcmp.gt.f32.partialorder %v771_v26, 0.0 }
 0x339   :  { %1013 = vmatpush.msrb.mxu2 %v1010_v25  ;;  %v1309_v25 = vld [vmem:[#allocation24 + $0x30] sm:$0xff] }
 0x33a   :  { %v775_v28 = vsel %vm773_vm4, %v771_v26, %v774_v27  ;;  %v1009_v26 = vld [vmem:[%s3610_s11 + $0x68] sm:$0xff]  ;;  %v1008_v27 = vld [vmem:[%s3610_s11 + $0x60] sm:$0xff] }
 0x33b   :  { %1821 = vmatmul.msk.f32.vlgmr.msra.gmra.mxu2 %vm749_vm3, %v775_v28  ;;  %v1007_v28 = vld [vmem:[%s3610_s11 + $0x58] sm:$0xff] }
 0x33c   :  { %1014 = vmatpush.msrb.mxu2 %v1009_v26  ;;  %v1342_v26 = vld [vmem:[#allocation25 + $0x30] sm:$0xff] }
 0x33e   :  { %1015 = vmatpush.msrb.mxu2 %v1008_v27 }
 0x340   :  { %1016 = vmatpush.msrb.mxu2 %v1007_v28  ;;  %v1254_v28 = vld [vmem:[#allocation22 + $0x28] sm:$0xff] }
 0x3be   :  { %v806_v30 = vpop.f32.mrf.mxu2 }
 0x3bf   :  { %832 = vmatpush.xpose.msra.mxu3 %v806_v30  ;;  %877 = vmatpush.msrb.mxu0 %v806_v30  ;;  %v813_v31 = vmul.f32 %v1938_v29, %v806_v30  ;;  %v1006_v29 = vld [vmem:[%s3610_s11 + $0x50] sm:$0xff]  ;;  %v1005_v30 = vld [vmem:[%s3610_s11 + $0x48] sm:$0xff] }
 0x3c0   :  { %1017 = vmatpush.msrb.mxu2 %v1006_v29  ;;  %v1308_v29 = vld [vmem:[#allocation24 + $0x28] sm:$0xff] }
 0x3c1   :  { %814 = vadd.xlane.f32.xlu0 %v813_v31  ;;  %v1004_v31 = vld [vmem:[%s3610_s11 + $0x40] sm:$0xff] }
 0x3c2   :  { %833 = vmatmul.f32.vlgmr.msra.gmra.mxu3 %v816_v32  ;;  %1018 = vmatpush.msrb.mxu2 %v1005_v30  ;;  %v1003_v32 = vld [vmem:[%s3610_s11 + $0x38] sm:$0xff] }
 0x3c3   :  { %901 = vmatpush.msrb.mxu3 %v900_v47  ;;  %v1341_v30 = vld [vmem:[#allocation25 + $0x28] sm:$0xff] }
 0x3c4   :  { %1019 = vmatpush.msrb.mxu2 %v1004_v31  ;;  %v1253_v31 = vld [vmem:[#allocation22 + $0x20] sm:$0xff] }
 0x3c5   :  { %902 = vmatpush.msrb.mxu3 %v899_v48 }
 0x3c6   :  { %1020 = vmatpush.msrb.mxu2 %v1003_v32  ;;  %v1307_v32 = vld [vmem:[#allocation24 + $0x20] sm:$0xff] }
 0x3c7   :  { %903 = vmatpush.msrb.mxu3 %v898_v49  ;;  %v1942_v49 = vld [vmem:[#allocation13] ss:$0 sm:$0xff] }
 0x3c9   :  { %904 = vmatpush.msrb.mxu3 %v897_v50 }
 0x3cb   :  { %905 = vmatpush.msrb.mxu3 %v896_v51  ;;  %v1040_v51 = vld [vmem:[#allocation12] sm:$0x1] }
 0x3cd   :  { %906 = vmatpush.msrb.mxu3 %v895_v52 }
 0x3cf   :  { %907 = vmatpush.msrb.mxu3 %v894_v53 }
 0x3d1   :  { %908 = vmatpush.msrb.mxu3 %v893_v54 }
 0x3d3   :  { %909 = vmatpush.msrb.mxu3 %v892_v55 }
 0x3d5   :  { %910 = vmatpush.msrb.mxu3 %v891_v56 }
 0x3d7   :  { %911 = vmatpush.msrb.mxu3 %v890_v57 }
 0x3d9   :  { %912 = vmatpush.msrb.mxu3 %v889_v58 }
 0x3db   :  { %913 = vmatpush.msrb.mxu3 %v888_v60 }
 0x3dd   :  { %914 = vmatpush.msrb.mxu3 %v887_v63  ;;  %v1115_v63 = vld [vmem:[%s3611_s15] sm:$0xff] }
 0x3df   :  { %915 = vmatpush.msrb.mxu3 %v886_v0  ;;  %v1114_v0 = vld [vmem:[%s3612_s16] sm:$0xff] }
 0x3e1   :  { %916 = vmatpush.msrb.mxu3 %v885_v1  ;;  %v1199_v1 = vld [vmem:[#allocation18 + $0x8] sm:$0xf] }
 0x434   :  { %v815_v35 = vpop.xlane.xlu0 %814 }
 0x445   :  { %v834_v33 = vpop.f32.mrf.mxu3 }
 0x446   :  { %v837_v34 = vperm.slane %v834_v33, 0  ;;  %v1002_v33 = vld [vmem:[%s3610_s11 + $0x30] sm:$0xff] }
 0x447   :  { %1021 = vmatpush.msrb.mxu2 %v1002_v33  ;;  %v1340_v33 = vld [vmem:[#allocation25 + $0x20] sm:$0xff] }
 0x448   :  { %v838_v37 = vadd.f32 %v837_v34, %v815_v35  ;;  %v1001_v34 = vld [vmem:[%s3610_s11 + $0x28] sm:$0xff]  ;;  %v1000_v35 = vld [vmem:[%s3610_s11 + $0x20] sm:$0xff] }
 0x449   :  { %1022 = vmatpush.msrb.mxu2 %v1001_v34  ;;  %v1252_v34 = vld [vmem:[#allocation22 + $0x18] sm:$0xff] }
 0x44a   :  { %vm839_vm6 = vcmp.gt.f32.partialorder %v838_v37, 0.0  ;;  %v840_v38 = vmul.f32 0.2, %v838_v37 }
 0x44b   :  { %1023 = vmatpush.msrb.mxu2 %v1000_v35  ;;  %v1306_v35 = vld [vmem:[#allocation24 + $0x18] sm:$0xff] }
 0x44c   :  { %v841_v39 = vsel %vm839_vm6, %v838_v37, %v840_v38  ;;  %v999_v38 = vld [vmem:[%s3610_s11 + $0x18] sm:$0xff] }
 0x44d   :  { %v842_v40 = vsel %vm777_vm5, %v841_v39, -1e+30  ;;  %1024 = vmatpush.msrb.mxu2 %v999_v38  ;;  %v1251_v38 = vld [vmem:[#allocation22 + $0x10] sm:$0xff] }
 0x44e   :  { %v844_v41 = vsel %vm843_vm7, %v842_v40, -inf }
 0x44f   :  { %845 = vmax.xlane.f32.xlu0 %v844_v41  ;;  %v998_v41 = vld [vmem:[%s3610_s11 + $0x10] sm:$0xff] }
 0x450   :  { %1025 = vmatpush.msrb.mxu2 %v998_v41 }
 0x4c2   :  { %v846_v42 = vpop.xlane.xlu0 %845 }
 0x4c3   :  { %v847_v43 = vsub.f32 %v842_v40, %v846_v42  ;;  %v997_v42 = vld [vmem:[%s3610_s11 + $0x8] sm:$0xff] }
 0x4c4   :  { %1026 = vmatpush.msrb.mxu2 %v997_v42  ;;  %v1250_v42 = vld [vmem:[#allocation22 + $0x8] sm:$0xff] }
 0x4c5   :  { %v848_v44 = vmul.f32 1.442695, %v847_v43  ;;  %v996_v43 = vld [vmem:[%s3610_s11] sm:$0xff] }
 0x4c6   :  { %1027 = vmatpush.msrb.mxu2 %v996_v43  ;;  %v1304_v43 = vld [vmem:[#allocation24 + $0x8] sm:$0xff] }
 0x4c7   :  { %1958 = vpow2.f32 %v848_v44  ;;  %v1941_v44 = vld [vmem:[#allocation10] ss:$0 sm:$0xff] }
 0x4cd   :  { %v1959_v45 = vpop.eup %1958 }
 0x4ce   :  { %v850_v46 = vsel %vm843_vm7, %v1959_v45, 0.0 }
 0x4cf   :  { %851 = vadd.xlane.f32.xlu1 %v850_v46 }
 0x542   :  { %v852_v59 = vpop.xlane.xlu1 %851 }
 0x543   :  { %1960 = vrcp.f32 %v852_v59 }
 0x549   :  { %v1961_v61 = vpop.eup %1960 }
 0x54a   :  { %v854_v62 = vmul.f32 %v1961_v61, %v1959_v45 }
 0x54c   :  { %1822 = vmatmul.msk.f32.vlgmr.msrb.gmra.mxu0 %vm843_vm7, %v854_v62  ;;  %v1116_v62 = vld [vmem:[%s3611_s15 + $0x8] sm:$0xf] }
 0x5c9   :  { %v879_v3 = vpop.f32.mrf.mxu0 }
 0x5ca   :  { %v880_v4 = vadd.f32 %v1939_v2, %v879_v3  ;;  %v1198_v2 = vld [vmem:[#allocation18] sm:$0xff] }
 0x5cc   :  { %v883_v5 = vmul.f32 0.01, %v880_v4  ;;  %vm882_vm8 = vcmp.gt.f32.partialorder %v880_v4, 0.0 }
 0x5ce   :  { %v884_v6 = vsel %vm882_vm8, %v880_v4, %v883_v5 }
 0x5cf   :  { %917 = vmatmul.f32.vlgmr.msrb.gmra.mxu3 %v884_v6 }
 0x652   :  { %v918_v8 = vpop.f32.mrf.mxu3 }
 0x653   :  { %944 = vmatpush.xpose.msra.mxu0 %v918_v8  ;;  %988 = vmatpush.msrb.mxu1 %v918_v8  ;;  %v925_v9 = vmul.f32 %v1940_v7, %v918_v8  ;;  %v1169_v7 = vld [vmem:[#allocation16 + $0x8] sm:$0xf]  ;;  %v1168_v8 = vld [vmem:[#allocation16] sm:$0xff] }
 0x655   :  { %926 = vadd.xlane.f32.xlu1 %v925_v9 }
 0x656   :  { %945 = vmatmul.f32.vlgmr.msra.gmra.mxu0 %v928_v10 }
 0x6c8   :  { %v927_v13 = vpop.xlane.xlu1 %926 }
 0x6d3   :  { %v946_v11 = vpop.f32.mrf.mxu0 }
 0x6d4   :  { %v949_v12 = vperm.slane %v946_v11, 0 }
 0x6d6   :  { %v950_v14 = vadd.f32 %v949_v12, %v927_v13  ;;  %v1943_v12 = vld [vmem:[%s3613_s12] ss:$0 sm:$0xff] }
 0x6d8   :  { %vm951_vm9 = vcmp.gt.f32.partialorder %v950_v14, 0.0  ;;  %v952_v15 = vmul.f32 0.2, %v950_v14 }
 0x6da   :  { %v953_v16 = vsel %vm951_vm9, %v950_v14, %v952_v15 }
 0x6db   :  { %v954_v17 = vsel %vm777_vm5, %v953_v16, -1e+30  ;;  %v1944_v16 = vld [vmem:[#allocation21] ss:$0 sm:$0xff] }
 0x6dc   :  { %v955_v18 = vsel %vm843_vm7, %v954_v17, -inf }
 0x6dd   :  { %956 = vmax.xlane.f32.xlu2 %v955_v18 }
 0x750   :  { %v957_v19 = vpop.xlane.xlu2 %956 }
 0x751   :  { %v958_v20 = vsub.f32 %v954_v17, %v957_v19 }
 0x753   :  { %v959_v21 = vmul.f32 1.442695, %v958_v20  ;;  %v1256_v20 = vld [vmem:[#allocation22 + $0x38] sm:$0xff] }
 0x754   :  { %1272 = vmatpush.msra.mxu3 %v1256_v20 }
 0x755   :  { %1962 = vpow2.f32 %v959_v21  ;;  %v1310_v21 = vld [vmem:[#allocation24 + $0x38] sm:$0xff] }
 0x756   :  { %1273 = vmatpush.msra.mxu3 %v1255_v24  ;;  %v1450_v24 = vld [vmem:[#allocation33 + $0x30] sm:$0xff] }
 0x758   :  { %1274 = vmatpush.msra.mxu3 %v1254_v28  ;;  %v1449_v28 = vld [vmem:[#allocation33 + $0x28] sm:$0xff] }
 0x75a   :  { %1275 = vmatpush.msra.mxu3 %v1253_v31  ;;  %v1448_v31 = vld [vmem:[#allocation33 + $0x20] sm:$0xff] }
 0x75b   :  { %v1963_v22 = vpop.eup %1962 }
 0x75c   :  { %v961_v23 = vsel %vm843_vm7, %v1963_v22, 0.0  ;;  %1276 = vmatpush.msra.mxu3 %v1252_v34 }
 0x75d   :  { %962 = vadd.xlane.f32.xlu2 %v961_v23 }
 0x75e   :  { %1277 = vmatpush.msra.mxu3 %v1251_v38  ;;  %v1614_v38 = vld [vmem:[#allocation46 + $0x38] sm:$0xff] }
 0x760   :  { %1278 = vmatpush.msra.mxu3 %v1250_v42  ;;  %v1613_v42 = vld [vmem:[#allocation46 + $0x30] sm:$0xff] }
 0x7d0   :  { %v963_v37 = vpop.xlane.xlu2 %962 }
 0x7d1   :  { %1964 = vrcp.f32 %v963_v37  ;;  %v1339_v37 = vld [vmem:[#allocation25 + $0x18] sm:$0xff] }
 0x7d7   :  { %v1965_v39 = vpop.eup %1964 }
 0x7d8   :  { %v965_v40 = vmul.f32 %v1965_v39, %v1963_v22  ;;  %v1343_v22 = vld [vmem:[#allocation25 + $0x38] sm:$0xff]  ;;  %v1305_v39 = vld [vmem:[#allocation24 + $0x10] sm:$0xff] }
 0x7da   :  { %1823 = vmatmul.msk.f32.vlgmr.msrb.gmra.mxu1 %vm843_vm7, %v965_v40  ;;  %v1338_v40 = vld [vmem:[#allocation25 + $0x10] sm:$0xff] }
 0x857   :  { %v990_v45 = vpop.f32.mrf.mxu1 }
 0x858   :  { %v991_v46 = vadd.f32 %v1941_v44, %v990_v45  ;;  %v1337_v44 = vld [vmem:[#allocation25 + $0x8] sm:$0xff]  ;;  %v1249_v45 = vld [vmem:[#allocation22] sm:$0xff] }
 0x859   :  { %1279 = vmatpush.msra.mxu3 %v1249_v45 }
 0x85a   :  { %v994_v47 = vmul.f32 0.01, %v991_v46  ;;  %vm993_vm10 = vcmp.gt.f32.partialorder %v991_v46, 0.0 }
 0x85c   :  { %v995_v48 = vsel %vm993_vm10, %v991_v46, %v994_v47  ;;  %v1303_v46 = vld [vmem:[#allocation24] sm:$0xff] }
 0x85d   :  { %1028 = vmatmul.f32.vlgmr.msrb.gmra.mxu2 %v995_v48  ;;  %v1336_v48 = vld [vmem:[#allocation25] sm:$0xff] }
 0x8e0   :  { %v1029_v50 = vpop.f32.mrf.mxu2 }
 0x8e1   :  { %1824 = vmatpush.xpose.msk.msrb.mxu0 %vm749_vm3, %v1029_v50  ;;  %1106 = vmatpush.msra.mxu1 %v1029_v50  ;;  %v1036_v52 = vmul.f32 %v1942_v49, %v1029_v50 }
 0x8e3   :  { %v1037_v53 = vsel %vm749_vm3, %v1036_v52, 0.0  ;;  %1830 = vmatpush.msk.msrb.mxu1 %vm1125_vm12, %v1169_v7 }
 0x8e4   :  { %1825 = vmatmul.msk.f32.vlgmr.msrb.gmra.mxu0 %vm749_vm3, %v1040_v51  ;;  %1038 = vadd.xlane.f32.xlu0 %v1037_v53 }
 0x8e5   :  { %1827 = vmatpush.msk.msra.mxu0 %vm1125_vm12, %v1116_v62  ;;  %1192 = vmatpush.msrb.mxu1 %v1168_v8 }
 0x8e7   :  { %1144 = vmatpush.msra.mxu0 %v1115_v63 }
 0x8e9   :  { %1832 = vmatpush.msk.msrb.mxu0 %vm1125_vm12, %v1199_v1 }
 0x8eb   :  { %1222 = vmatpush.msrb.mxu0 %v1198_v2 }
 0x8ec   :  { %1828 = vmatmul.msk.f32.vlgmr.msra.gmra.mxu0 %vm1121_vm13, %v1114_v0 }
 0x8ed   :  { %1356 = vmatpush.msra.mxu0 %v1343_v22  ;;  %v1949_v22 = vld [vmem:[#allocation27] ss:$0 sm:$0xff] }
 0x8ef   :  { %1357 = vmatpush.msra.mxu0 %v1342_v26  ;;  %v1479_v26 = vld [vmem:[#allocation34 + $0x10] sm:$0xff] }
 0x8f1   :  { %1358 = vmatpush.msra.mxu0 %v1341_v30  ;;  %v1394_v30 = vld [vmem:[#allocation31 + $0x20] sm:$0xff] }
 0x8f3   :  { %1359 = vmatpush.msra.mxu0 %v1340_v33  ;;  %v1477_v33 = vld [vmem:[#allocation34] sm:$0xff] }
 0x8f4   :  { %1833 = vmatmul.msk.f32.vlgmr.msrb.gmra.mxu0 %vm1121_vm13, %v1114_v0 }
 0x8f5   :  { %1360 = vmatpush.msra.mxu0 %v1339_v37  ;;  %v1447_v37 = vld [vmem:[#allocation33 + $0x18] sm:$0xff] }
 0x8f7   :  { %1361 = vmatpush.msra.mxu0 %v1338_v40  ;;  %v1392_v40 = vld [vmem:[#allocation31 + $0x10] sm:$0xff] }
 0x8f9   :  { %1362 = vmatpush.msra.mxu0 %v1337_v44  ;;  %v1445_v44 = vld [vmem:[#allocation33 + $0x8] sm:$0xff] }
 0x8fb   :  { %1363 = vmatpush.msra.mxu0 %v1336_v48  ;;  %v1390_v48 = vld [vmem:[#allocation31] sm:$0xff] }
 0x957   :  { %v1039_v56 = vpop.xlane.xlu0 %1038 }
 0x961   :  { %v1064_v54 = vpop.f32.mrf.mxu0 }
 0x962   :  { %v1067_v55 = vperm.slane %v1064_v54, 0  ;;  %v1946_v54 = vld [vmem:[#allocation19] ss:$0 sm:$0xff] }
 0x964   :  { %v1068_v57 = vadd.f32 %v1067_v55, %v1039_v56 }
 0x966   :  { %vm1069_vm11 = vcmp.gt.f32.partialorder %v1068_v57, 0.0  ;;  %v1070_v58 = vmul.f32 0.2, %v1068_v57 }
 0x968   :  { %v1071_v59 = vsel %vm1069_vm11, %v1068_v57, %v1070_v58 }
 0x969   :  { %v1072_v60 = vsel %vm777_vm5, %v1071_v59, -1e+30  ;;  %v1146_v13 = vpop.f32.mrf.mxu0 }
 0x96a   :  { %v1073_v61 = vsel %vm843_vm7, %v1072_v60, -inf  ;;  %v1147_v14 = vadd.f32 %v1943_v12, %v1146_v13  ;;  %v1484_v12 = vld [vmem:[#allocation34 + $0x38] sm:$0xff]  ;;  %v1483_v13 = vld [vmem:[#allocation34 + $0x30] sm:$0xff] }
 0x96b   :  { %1074 = vmax.xlane.f32.xlu1 %v1073_v61 }
 0x96c   :  { %v1829_v15 = vmul.f32 -1.442695, %v1147_v14  ;;  %v1948_v14 = vld [vmem:[#allocation30] ss:$0 sm:$0xff] }
 0x971   :  { %v1224_v17 = vpop.f32.mrf.mxu0 }
 0x972   :  { %v1225_v18 = vadd.f32 %v1944_v16, %v1224_v17  ;;  %v1481_v16 = vld [vmem:[#allocation34 + $0x20] sm:$0xff] }
 0x974   :  { %v1834_v19 = vmul.f32 -1.442695, %v1225_v18  ;;  %v1397_v18 = vld [vmem:[#allocation31 + $0x38] sm:$0xff] }
 0x975   :  { %1413 = vmatpush.msra.mxu2 %v1397_v18 }
 0x9de   :  { %v1075_v36 = vpop.xlane.xlu1 %1074 }
 0x9df   :  { %v1076_v3 = vsub.f32 %v1072_v60, %v1075_v36 }
 0x9e1   :  { %v1077_v4 = vmul.f32 1.442695, %v1076_v3 }
 0x9e3   :  { %1966 = vpow2.f32 %v1077_v4 }
 0x9e9   :  { %v1967_v5 = vpop.eup %1966 }
 0x9ea   :  { %v1079_v6 = vsel %vm843_vm7, %v1967_v5, 0.0 }
 0x9eb   :  { %1080 = vadd.xlane.f32.xlu2 %v1079_v6 }
 0xa5e   :  { %v1081_v9 = vpop.xlane.xlu2 %1080 }
 0xa5f   :  { %1968 = vrcp.f32 %v1081_v9 }
 0xa60   :  { %1970 = vpow2.f32 %v1829_v15  ;;  %v1482_v15 = vld [vmem:[#allocation34 + $0x28] sm:$0xff] }
 0xa61   :  { %1972 = vpow2.f32 %v1834_v19  ;;  %v1451_v19 = vld [vmem:[#allocation33 + $0x38] sm:$0xff] }
 0xa62   :  { %1464 = vmatpush.msrb.mxu3 %v1451_v19 }
 0xa64   :  { %1465 = vmatpush.msrb.mxu3 %v1450_v24  ;;  %v1950_v24 = vld [vmem:[#allocation39] ss:$0 sm:$0xff] }
 0xa65   :  { %v1969_v10 = vpop.eup %1968 }
 0xa66   :  { %v1083_v11 = vmul.f32 %v1969_v10, %v1967_v5  ;;  %v1971_v23 = vpop.eup %1970  ;;  %1466 = vmatpush.msrb.mxu3 %v1449_v28  ;;  %v1951_v28 = vld [vmem:[#allocation36] ss:$0 sm:$0xff] }
 0xa67   :  { %v3496_v27 = vadd.f32 1.0, %v1971_v23  ;;  %v1973_v41 = vpop.eup %1972  ;;  %v1396_v23 = vld [vmem:[#allocation31 + $0x30] sm:$0xff] }
 0xa68   :  { %1826 = vmatmul.msk.f32.vlgmr.msra.gmra.mxu1 %vm843_vm7, %v1083_v11  ;;  %v1230_v47 = vadd.f32 1.0, %v1973_v41  ;;  %1414 = vmatpush.msra.mxu2 %v1396_v23  ;;  %v1446_v41 = vld [vmem:[#allocation33 + $0x10] sm:$0xff] }
 0xa69   :  { %1323 = vmatpush.msra.mxu1 %v1310_v21  ;;  %1974 = vrcp.f32 %v3496_v27  ;;  %vm1158_vm14 = vweird.f32 %v3496_v27  ;;  %v1164_v58 = vand.u32 2147483648, %v3496_v27  ;;  %v1162_v61 = vand.u32 2147483647, %v3496_v27  ;;  %v1480_v21 = vld [vmem:[#allocation34 + $0x18] sm:$0xff]  ;;  %1467 = vmatpush.msrb.mxu3 %v1448_v31 }
 0xa6a   :  { %1976 = vrcp.f32 %v1230_v47  ;;  %vm1236_vm2 = vweird.f32 %v1230_v47  ;;  %v1242_v3 = vand.u32 2147483648, %v1230_v47  ;;  %v1240_v6 = vand.u32 2147483647, %v1230_v47 }
 0xa6b   :  { %1324 = vmatpush.msra.mxu1 %v1309_v25  ;;  %v1165_v63 = vor.u32 1.1754944e-38, %v1164_v58  ;;  %vm1163_vm1 = vcmp.eq.f32.partialorder %v1162_v61, 8.507059e+37  ;;  %1468 = vmatpush.msrb.mxu3 %v1447_v37  ;;  %v1607_v58 = vld [vmem:[#allocation46] sm:$0xff]  ;;  %v1533_v37 = vld [vmem:[#allocation40 + $0x10] sm:$0xff] }
 0xa6c   :  { %v1243_v7 = vor.u32 1.1754944e-38, %v1242_v3  ;;  %vm1241_vm6 = vcmp.eq.f32.partialorder %v1240_v6, 8.507059e+37 }
 0xa6d   :  { %1325 = vmatpush.msra.mxu1 %v1308_v29  ;;  %v1478_v29 = vld [vmem:[#allocation34 + $0x8] sm:$0xff]  ;;  %1469 = vmatpush.msrb.mxu3 %v1446_v41 }
 0xa6e   :  { %v1531_v41 = vld [vmem:[#allocation40] sm:$0xff] }
 0xa6f   :  { %1326 = vmatpush.msra.mxu1 %v1307_v32  ;;  %v1975_v49 = vpop.eup %1974  ;;  %1470 = vmatpush.msrb.mxu3 %v1445_v44 }
 0xa70   :  { %1831 = vmatmul.msk.f32.vlgmr.msrb.gmra.mxu1 %vm1121_vm13, %v1114_v0  ;;  %v1154_v50 = vmul.f32 %v1975_v49, %v3496_v27  ;;  %v1977_v53 = vpop.eup %1976  ;;  %vm1159_vm15 = vweird.f32 %v1975_v49  ;;  %v1395_v27 = vld [vmem:[#allocation31 + $0x28] sm:$0xff] }
 0xa71   :  { %1327 = vmatpush.msra.mxu1 %v1306_v35  ;;  %v1232_v56 = vmul.f32 %v1977_v53, %v1230_v47  ;;  %vm1160_vm0 = vmor %vm1158_vm14, %vm1159_vm15  ;;  %vm1237_vm4 = vweird.f32 %v1977_v53  ;;  %1415 = vmatpush.msra.mxu2 %v1395_v27  ;;  %v1393_v35 = vld [vmem:[#allocation31 + $0x18] sm:$0xff] }
 0xa72   :  { %v1155_v52 = vsub.f32 1.0, %v1154_v50  ;;  %vm1238_vm5 = vmor %vm1236_vm2, %vm1237_vm4  ;;  %v1611_v50 = vld [vmem:[#allocation46 + $0x20] sm:$0xff] }
 0xa73   :  { %1328 = vmatpush.msra.mxu1 %v1305_v39  ;;  %v1233_v62 = vsub.f32 1.0, %v1232_v56  ;;  %1416 = vmatpush.msra.mxu2 %v1394_v30  ;;  %v1608_v56 = vld [vmem:[#allocation46 + $0x8] sm:$0xff] }
 0xa74   :  { %v1156_v55 = vmul.f32 %v1975_v49, %v1155_v52 }
 0xa75   :  { %1329 = vmatpush.msra.mxu1 %v1304_v43  ;;  %v1234_v1 = vmul.f32 %v1977_v53, %v1233_v62  ;;  %1417 = vmatpush.msra.mxu2 %v1393_v35  ;;  %v1391_v43 = vld [vmem:[#allocation31 + $0x8] sm:$0xff] }
 0xa76   :  { %v1157_v60 = vadd.f32 %v1975_v49, %v1156_v55  ;;  %v1609_v55 = vld [vmem:[#allocation46 + $0x10] sm:$0xff] }
 0xa77   :  { %1330 = vmatpush.msra.mxu1 %v1303_v46  ;;  %v1235_v5 = vadd.f32 %v1977_v53, %v1234_v1  ;;  %1418 = vmatpush.msra.mxu2 %v1392_v40  ;;  %v1612_v46 = vld [vmem:[#allocation46 + $0x28] sm:$0xff] }
 0xa78   :  { %v1161_v0 = vsel %vm1160_vm0, %v1975_v49, %v1157_v60  ;;  %v1444_v49 = vld [vmem:[#allocation33] sm:$0xff] }
 0xa79   :  { %v1166_v36 = vsel %vm1163_vm1, %v1165_v63, %v1161_v0  ;;  %v1239_v8 = vsel %vm1238_vm5, %v1977_v53, %v1235_v5  ;;  %1497 = vmatpush.msrb.mxu1 %v1484_v12  ;;  %1419 = vmatpush.msra.mxu2 %v1391_v43  ;;  %v1610_v53 = vld [vmem:[#allocation46 + $0x18] sm:$0xff]  ;;  %v1575_v43 = vld [vmem:[#allocation43 + $0x30] sm:$0xff] }
 0xa7a   :  { %v1244_v10 = vsel %vm1241_vm6, %v1243_v7, %v1239_v8  ;;  %1471 = vmatpush.msrb.mxu3 %v1444_v49  ;;  %v1572_v49 = vld [vmem:[#allocation43 + $0x18] sm:$0xff] }
 0xa7b   :  { %1498 = vmatpush.msrb.mxu1 %v1483_v13  ;;  %1420 = vmatpush.msra.mxu2 %v1390_v48  ;;  %v1952_v48 = vld [vmem:[#allocation37] ss:$0 sm:$0xff] }
 0xa7d   :  { %1499 = vmatpush.msrb.mxu1 %v1482_v15 }
 0xa7f   :  { %1500 = vmatpush.msrb.mxu1 %v1481_v16 }
 0xa81   :  { %1501 = vmatpush.msrb.mxu1 %v1480_v21 }
 0xa83   :  { %1502 = vmatpush.msrb.mxu1 %v1479_v26  ;;  %v1538_v26 = vld [vmem:[#allocation40 + $0x38] sm:$0xff] }
 0xa84   :  { %1554 = vmatpush.msrb.mxu0 %v1538_v26  ;;  %v1616_v26 = vld [vmem:[#allocation48 + $0x8] sm:$0xff] }
 0xa85   :  { %1503 = vmatpush.msrb.mxu1 %v1478_v29  ;;  %v1537_v29 = vld [vmem:[#allocation40 + $0x30] sm:$0xff] }
 0xa86   :  { %1555 = vmatpush.msrb.mxu0 %v1537_v29  ;;  %v1681_v29 = vld [vmem:[#allocation51 + $0x30] sm:$0xff] }
 0xa87   :  { %1504 = vmatpush.msrb.mxu1 %v1477_v33  ;;  %v1535_v33 = vld [vmem:[#allocation40 + $0x20] sm:$0xff] }
 0xae5   :  { %v3500_v51 = vpop.f32.mrf.mxu1 }
 0xaed   :  { %v1194_v57 = vpop.f32.mrf.mxu1 }
 0xaee   :  { %v1195_v59 = vadd.f32 %v1946_v54, %v1194_v57  ;;  %v1947_v57 = vld [vmem:[#allocation28] ss:$0 sm:$0xff] }
 0xaf0   :  { %1978 = vtanh.f32 %v1195_v59 }
 0xaf6   :  { %v1979_v2 = vpop.eup %1978 }
 0xaf7   :  { %v1246_v4 = vmul.f32 %v1979_v2, %v1166_v36 }
 0xaf9   :  { %1980 = vtanh.f32 %v1246_v4 }
 0xaff   :  { %v1981_v9 = vpop.eup %1980 }
 0xb00   :  { %v1248_v11 = vmul.f32 %v1981_v9, %v1244_v10 }
 0xb02   :  { %1835 = vmatmul.msk.f32.vlgmr.msra.gmra.mxu3 %vm749_vm3, %v1248_v11  ;;  %1837 = vmatmul.msk.f32.vlgmr.msra.gmra.mxu1 %vm749_vm3, %v1248_v11 }
 0xb03   :  { %1838 = vmatmul.msk.f32.vlgmr.msra.gmra.mxu0 %vm749_vm3, %v1248_v11  ;;  %1657 = vmatpush.msra.mxu1 %v1614_v38  ;;  %v1532_v38 = vld [vmem:[#allocation40 + $0x8] sm:$0xff] }
 0xb05   :  { %1658 = vmatpush.msra.mxu1 %v1613_v42  ;;  %v1576_v42 = vld [vmem:[#allocation43 + $0x38] sm:$0xff] }
 0xb06   :  { %1592 = vmatpush.msrb.mxu2 %v1576_v42  ;;  %v1717_v42 = vld [vmem:[%s3205_s8 + $0x30] sm:$0xff] }
 0xb07   :  { %1659 = vmatpush.msra.mxu1 %v1612_v46  ;;  %v1574_v46 = vld [vmem:[#allocation43 + $0x28] sm:$0xff] }
 0xb08   :  { %1593 = vmatpush.msrb.mxu2 %v1575_v43  ;;  %v1716_v43 = vld [vmem:[%s3205_s8 + $0x28] sm:$0xff] }
 0xb09   :  { %1660 = vmatpush.msra.mxu1 %v1611_v50 }
 0xb0a   :  { %1594 = vmatpush.msrb.mxu2 %v1574_v46  ;;  %v1955_v46 = vld [vmem:[#allocation49] ss:$0 sm:$0xff] }
 0xb0b   :  { %1661 = vmatpush.msra.mxu1 %v1610_v53 }
 0xb0d   :  { %1662 = vmatpush.msra.mxu1 %v1609_v55 }
 0xb0f   :  { %1663 = vmatpush.msra.mxu1 %v1608_v56 }
 0xb11   :  { %1664 = vmatpush.msra.mxu1 %v1607_v58 }
 0xb7f   :  { %v1332_v60 = vpop.f32.mrf.mxu1 }
 0xb80   :  { %v1365_v17 = vpop.f32.mrf.mxu0  ;;  %v1333_v62 = vadd.f32 %v1947_v57, %v1332_v60 }
 0xb81   :  { %v1366_v20 = vadd.f32 %v1948_v14, %v1365_v17  ;;  %v1945_v17 = vld [vmem:[#allocation15] ss:$0 sm:$0xff] }
 0xb82   :  { %v1109_v21 = vadd.f32 %v1945_v17, %v3500_v51  ;;  %v1536_v51 = vld [vmem:[#allocation40 + $0x28] sm:$0xff] }
 0xb83   :  { %v1839_v25 = vmul.f32 -1.442695, %v1366_v20  ;;  %1556 = vmatpush.msrb.mxu0 %v1536_v51  ;;  %v1620_v17 = vld [vmem:[#allocation48 + $0x28] sm:$0xff] }
 0xb84   :  { %vm1111_vm15 = vcmp.gt.f32.partialorder %v1109_v21, 0.0  ;;  %v1679_v51 = vld [vmem:[#allocation51 + $0x20] sm:$0xff] }
 0xb85   :  { %1982 = vpow2.f32 %v1839_v25  ;;  %v1281_v32 = vpop.f32.mrf.mxu3  ;;  %1557 = vmatpush.msrb.mxu0 %v1535_v33 }
 0xb86   :  { %v1282_v34 = vadd.f32 %v1949_v22, %v1281_v32  ;;  %v1112_v22 = vmul.f32 0.01, %v1109_v21 }
 0xb88   :  { %v1836_v39 = vmul.f32 -1.442695, %v1282_v34  ;;  %v1113_v23 = vsel %vm1111_vm15, %v1109_v21, %v1112_v22  ;;  %v1534_v34 = vld [vmem:[#allocation40 + $0x18] sm:$0xff] }
 0xb89   :  { %1558 = vmatpush.msrb.mxu0 %v1534_v34 }
 0xb8a   :  { %1984 = vpow2.f32 %v1836_v39 }
 0xb8b   :  { %v1983_v45 = vpop.eup %1982  ;;  %1559 = vmatpush.msrb.mxu0 %v1533_v37  ;;  %v1678_v37 = vld [vmem:[#allocation51 + $0x18] sm:$0xff] }
 0xb8c   :  { %v1371_v47 = vadd.f32 1.0, %v1983_v45 }
 0xb8d   :  { %1560 = vmatpush.msrb.mxu0 %v1532_v38  ;;  %v1677_v38 = vld [vmem:[#allocation51 + $0x10] sm:$0xff] }
 0xb8e   :  { %1986 = vrcp.f32 %v1371_v47  ;;  %v1383_v13 = vand.u32 2147483648, %v1371_v47  ;;  %vm1377_vm12 = vweird.f32 %v1371_v47  ;;  %v1381_v14 = vand.u32 2147483647, %v1371_v47 }
 0xb8f   :  { %1561 = vmatpush.msrb.mxu0 %v1531_v41  ;;  %v1718_v41 = vld [vmem:[%s3205_s8 + $0x38] sm:$0xff] }
 0xb90   :  { %v1985_v52 = vpop.eup %1984  ;;  %v1384_v16 = vor.u32 1.1754944e-38, %v1383_v13  ;;  %vm1382_vm14 = vcmp.eq.f32.partialorder %v1381_v14, 8.507059e+37  ;;  %v1570_v13 = vld [vmem:[#allocation43 + $0x8] sm:$0xff]  ;;  %v1569_v14 = vld [vmem:[#allocation43] sm:$0xff] }
 0xb91   :  { %v1287_v54 = vadd.f32 1.0, %v1985_v52 }
 0xb93   :  { %1988 = vrcp.f32 %v1287_v54  ;;  %v1299_v36 = vand.u32 2147483648, %v1287_v54  ;;  %v1297_v4 = vand.u32 2147483647, %v1287_v54  ;;  %vm1293_vm8 = vweird.f32 %v1287_v54 }
 0xb94   :  { %v1987_v59 = vpop.eup %1986  ;;  %1990 = vtanh.f32 %v1333_v62 }
 0xb95   :  { %v1373_v63 = vmul.f32 %v1987_v59, %v1371_v47  ;;  %v1300_v7 = vor.u32 1.1754944e-38, %v1299_v36  ;;  %vm1298_vm10 = vcmp.eq.f32.partialorder %v1297_v4, 8.507059e+37  ;;  %vm1378_vm11 = vweird.f32 %v1987_v59  ;;  %v1573_v47 = vld [vmem:[#allocation43 + $0x20] sm:$0xff] }
 0xb96   :  { %vm1379_vm13 = vmor %vm1377_vm12, %vm1378_vm11  ;;  %1595 = vmatpush.msrb.mxu2 %v1573_v47  ;;  %vm1746_vm11 = vcmask 31744  }
 0xb97   :  { %v1374_v2 = vsub.f32 1.0, %v1373_v63 }
 0xb98   :  { %1596 = vmatpush.msrb.mxu2 %v1572_v49 }
 0xb99   :  { %v1989_v61 = vpop.eup %1988  ;;  %v1375_v6 = vmul.f32 %v1987_v59, %v1374_v2 }
 0xb9a   :  { %v1289_v0 = vmul.f32 %v1989_v61, %v1287_v54  ;;  %vm1294_vm7 = vweird.f32 %v1989_v61  ;;  %v1991_v9 = vpop.eup %1990 }
 0xb9b   :  { %vm1295_vm9 = vmor %vm1293_vm8, %vm1294_vm7  ;;  %v1376_v12 = vadd.f32 %v1987_v59, %v1375_v6 }
 0xb9c   :  { %v1290_v1 = vsub.f32 1.0, %v1289_v0 }
 0xb9d   :  { %v1380_v15 = vsel %vm1379_vm13, %v1987_v59, %v1376_v12  ;;  %v1571_v12 = vld [vmem:[#allocation43 + $0x10] sm:$0xff] }
 0xb9e   :  { %v1291_v3 = vmul.f32 %v1989_v61, %v1290_v1  ;;  %v1385_v19 = vsel %vm1382_vm14, %v1384_v16, %v1380_v15  ;;  %1597 = vmatpush.msrb.mxu2 %v1571_v12  ;;  %v1622_v15 = vld [vmem:[#allocation48 + $0x38] sm:$0xff]  ;;  %v1621_v16 = vld [vmem:[#allocation48 + $0x30] sm:$0xff] }
 0xb9f   :  { %1634 = vmatpush.msra.mxu3 %v1622_v15 }
 0xba0   :  { %v1292_v5 = vadd.f32 %v1989_v61, %v1291_v3  ;;  %1598 = vmatpush.msrb.mxu2 %v1570_v13 }
 0xba1   :  { %1635 = vmatpush.msra.mxu3 %v1621_v16 }
 0xba2   :  { %v1296_v8 = vsel %vm1295_vm9, %v1989_v61, %v1292_v5  ;;  %1599 = vmatpush.msrb.mxu2 %v1569_v14 }
 0xba3   :  { %v1301_v10 = vsel %vm1298_vm10, %v1300_v7, %v1296_v8  ;;  %1636 = vmatpush.msra.mxu3 %v1620_v17 }
 0xba4   :  { %v1387_v11 = vmul.f32 %v1991_v9, %v1301_v10 }
 0xba6   :  { %1992 = vtanh.f32 %v1387_v11 }
 0xbac   :  { %v1993_v18 = vpop.eup %1992 }
 0xbad   :  { %v1389_v20 = vmul.f32 %v1993_v18, %v1385_v19  ;;  %v1619_v18 = vld [vmem:[#allocation48 + $0x20] sm:$0xff]  ;;  %v1618_v19 = vld [vmem:[#allocation48 + $0x18] sm:$0xff] }
 0xbae   :  { %1637 = vmatpush.msra.mxu3 %v1619_v18 }
 0xbaf   :  { %1840 = vmatmul.msk.f32.vlgmr.msra.gmra.mxu2 %vm749_vm3, %v1389_v20  ;;  %1842 = vmatmul.msk.f32.vlgmr.msrb.gmra.mxu3 %vm749_vm3, %v1389_v20 }
 0xbb0   :  { %1843 = vmatmul.msk.f32.vlgmr.msrb.gmra.mxu1 %vm749_vm3, %v1389_v20  ;;  %1638 = vmatpush.msra.mxu3 %v1618_v19  ;;  %v1953_v20 = vld [vmem:[#allocation42] ss:$0 sm:$0xff] }
 0xbb1   :  { %1734 = vmatpush.msra.mxu2 %v1718_v41 }
 0xbb3   :  { %1735 = vmatpush.msra.mxu2 %v1717_v42 }
 0xbb5   :  { %1736 = vmatpush.msra.mxu2 %v1716_v43 }
 0xbb8   :  { %1848 = vmatmul.msk.f32.vlgmr.msra.gmra.mxu1 %vm749_vm3, %v1113_v23 }
 0xc2d   :  { %v1506_v25 = vpop.f32.mrf.mxu1 }
 0xc2e   :  { %v1507_v27 = vadd.f32 %v1950_v24, %v1506_v25  ;;  %v1617_v25 = vld [vmem:[#allocation48 + $0x10] sm:$0xff] }
 0xc2f   :  { %1639 = vmatpush.msra.mxu3 %v1617_v25 }
 0xc30   :  { %v1844_v30 = vmul.f32 -1.442695, %v1507_v27  ;;  %v1615_v27 = vld [vmem:[#allocation48] sm:$0xff] }
 0xc31   :  { %1640 = vmatpush.msra.mxu3 %v1616_v26 }
 0xc32   :  { %1994 = vpow2.f32 %v1844_v30  ;;  %v1422_v31 = vpop.f32.mrf.mxu2  ;;  %v1473_v52 = vpop.f32.mrf.mxu3  ;;  %v1680_v30 = vld [vmem:[#allocation51 + $0x28] sm:$0xff] }
 0xc33   :  { %v1423_v32 = vadd.f32 %v1951_v28, %v1422_v31  ;;  %v1474_v55 = vadd.f32 %v1952_v48, %v1473_v52  ;;  %1641 = vmatpush.msra.mxu3 %v1615_v27  ;;  %v1682_v28 = vld [vmem:[#allocation51 + $0x38] sm:$0xff] }
 0xc34   :  { %1698 = vmatpush.msra.mxu0 %v1682_v28  ;;  %v1954_v31 = vld [vmem:[#allocation45] ss:$0 sm:$0xff] }
 0xc35   :  { %v1841_v35 = vmul.f32 -1.442695, %v1423_v32  ;;  %v1666_v47 = vpop.f32.mrf.mxu1 }
 0xc36   :  { %1699 = vmatpush.msra.mxu0 %v1681_v29 }
 0xc37   :  { %1996 = vpow2.f32 %v1841_v35 }
 0xc38   :  { %v1995_v39 = vpop.eup %1994  ;;  %1700 = vmatpush.msra.mxu0 %v1680_v30 }
 0xc39   :  { %v1512_v40 = vadd.f32 1.0, %v1995_v39  ;;  %v1676_v39 = vld [vmem:[#allocation51 + $0x8] sm:$0xff] }
 0xc3a   :  { %1701 = vmatpush.msra.mxu0 %v1679_v51 }
 0xc3b   :  { %1998 = vrcp.f32 %v1512_v40  ;;  %v1524_v5 = vand.u32 2147483648, %v1512_v40  ;;  %vm1518_vm6 = vweird.f32 %v1512_v40  ;;  %v1522_v6 = vand.u32 2147483647, %v1512_v40 }
 0xc3c   :  { %1702 = vmatpush.msra.mxu0 %v1678_v37 }
 0xc3d   :  { %v1997_v44 = vpop.eup %1996  ;;  %v1525_v8 = vor.u32 1.1754944e-38, %v1524_v5  ;;  %vm1523_vm8 = vcmp.eq.f32.partialorder %v1522_v6, 8.507059e+37 }
 0xc3e   :  { %v1428_v45 = vadd.f32 1.0, %v1997_v44  ;;  %1703 = vmatpush.msra.mxu0 %v1677_v38  ;;  %v1715_v44 = vld [vmem:[%s3205_s8 + $0x20] sm:$0xff] }
 0xc3f   :  { %1737 = vmatpush.msra.mxu2 %v1715_v44 }
 0xc40   :  { %2000 = vrcp.f32 %v1428_v45  ;;  %v1440_v59 = vand.u32 2147483648, %v1428_v45  ;;  %v1438_v61 = vand.u32 2147483647, %v1428_v45  ;;  %vm1434_vm1 = vweird.f32 %v1428_v45  ;;  %1704 = vmatpush.msra.mxu0 %v1676_v39 }
 0xc41   :  { %v1999_v50 = vpop.eup %1998  ;;  %2002 = vtanh.f32 %v1474_v55  ;;  %v1711_v55 = vld [vmem:[%s3205_s8] sm:$0xff] }
 0xc42   :  { %v1514_v54 = vmul.f32 %v1999_v50, %v1512_v40  ;;  %v1441_v0 = vor.u32 1.1754944e-38, %v1440_v59  ;;  %vm1439_vm4 = vcmp.eq.f32.partialorder %v1438_v61, 8.507059e+37  ;;  %vm1519_vm5 = vweird.f32 %v1999_v50  ;;  %v1675_v40 = vld [vmem:[#allocation51] sm:$0xff] }
 0xc43   :  { %vm1520_vm7 = vmor %vm1518_vm6, %vm1519_vm5  ;;  %1705 = vmatpush.msra.mxu0 %v1675_v40 }
 0xc44   :  { %v1515_v58 = vsub.f32 1.0, %v1514_v54  ;;  %v1712_v54 = vld [vmem:[%s3205_s8 + $0x8] sm:$0xff] }
 0xc46   :  { %v2001_v53 = vpop.eup %2000  ;;  %v1516_v63 = vmul.f32 %v1999_v50, %v1515_v58 }
 0xc47   :  { %v1430_v56 = vmul.f32 %v2001_v53, %v1428_v45  ;;  %vm1435_vm0 = vweird.f32 %v2001_v53  ;;  %v2003_v2 = vpop.eup %2002  ;;  %v1714_v45 = vld [vmem:[%s3205_s8 + $0x18] sm:$0xff] }
 0xc48   :  { %vm1436_vm2 = vmor %vm1434_vm1, %vm1435_vm0  ;;  %v1517_v4 = vadd.f32 %v1999_v50, %v1516_v63  ;;  %1738 = vmatpush.msra.mxu2 %v1714_v45 }
 0xc49   :  { %v1431_v57 = vsub.f32 1.0, %v1430_v56  ;;  %v1956_v56 = vld [vmem:[#allocation52] ss:$0 sm:$0xff] }
 0xc4a   :  { %v1521_v7 = vsel %vm1520_vm7, %v1999_v50, %v1517_v4 }
 0xc4b   :  { %v1432_v60 = vmul.f32 %v2001_v53, %v1431_v57  ;;  %v1526_v10 = vsel %vm1523_vm8, %v1525_v8, %v1521_v7 }
 0xc4d   :  { %v1433_v62 = vadd.f32 %v2001_v53, %v1432_v60  ;;  %v1957_v60 = vld [vmem:[#allocation54] ss:$0 sm:$0xff] }
 0xc4f   :  { %v1437_v1 = vsel %vm1436_vm2, %v2001_v53, %v1433_v62  ;;  %v1713_v53 = vld [vmem:[%s3205_s8 + $0x10] sm:$0xff] }
 0xc50   :  { %v1442_v36 = vsel %vm1439_vm4, %v1441_v0, %v1437_v1  ;;  %1739 = vmatpush.msra.mxu2 %v1713_v53 }
 0xc51   :  { %v1528_v3 = vmul.f32 %v2003_v2, %v1442_v36 }
 0xc52   :  { %1740 = vmatpush.msra.mxu2 %v1712_v54 }
 0xc53   :  { %2004 = vtanh.f32 %v1528_v3 }
 0xc54   :  { %1741 = vmatpush.msra.mxu2 %v1711_v55 }
 0xc59   :  { %v2005_v9 = vpop.eup %2004 }
 0xc5a   :  { %v1530_v11 = vmul.f32 %v2005_v9, %v1526_v10 }
 0xc5c   :  { %1845 = vmatmul.msk.f32.vlgmr.msrb.gmra.mxu0 %vm749_vm3, %v1530_v11 }
 0xcd9   :  { %v1563_v21 = vpop.f32.mrf.mxu0 }
 0xcda   :  { %v1564_v22 = vadd.f32 %v1953_v20, %v1563_v21 }
 0xcdc   :  { %vm1566_vm9 = vcmp.gt.f32.partialorder %v1564_v22, 0.0  ;;  %v1567_v23 = vmul.f32 0.01, %v1564_v22 }
 0xcde   :  { %v1568_v24 = vsel %vm1566_vm9, %v1564_v22, %v1567_v23 }
 0xcdf   :  { %1846 = vmatmul.msk.f32.vlgmr.msrb.gmra.mxu2 %vm749_vm3, %v1568_v24 }
 0xd62   :  { %v1601_v32 = vpop.f32.mrf.mxu2 }
 0xd63   :  { %v1602_v33 = vadd.f32 %v1954_v31, %v1601_v32 }
 0xd65   :  { %vm1604_vm10 = vcmp.gt.f32.partialorder %v1602_v33, 0.0  ;;  %v1605_v34 = vmul.f32 0.01, %v1602_v33 }
 0xd67   :  { %v1606_v35 = vsel %vm1604_vm10, %v1602_v33, %v1605_v34 }
 0xd68   :  { %1847 = vmatmul.msk.f32.vlgmr.msra.gmra.mxu3 %vm749_vm3, %v1606_v35 }
 0xdeb   :  { %v1643_v48 = vpop.f32.mrf.mxu3 }
 0xdec   :  { %v1667_v49 = vadd.f32 %v1666_v47, %v1643_v48 }
 0xdee   :  { %v1673_v50 = vadd.f32 %v1955_v46, %v1667_v49 }
 0xdf0   :  { %v1674_v52 = vmax.f32 %v1673_v50, 0.0 }
 0xdf2   :  { %1849 = vmatmul.msk.f32.vlgmr.msra.gmra.mxu0 %vm749_vm3, %v1674_v52 }
 0xe6f   :  { %v1707_v57 = vpop.f32.mrf.mxu0 }
 0xe70   :  { %v1708_v58 = vadd.f32 %v1956_v56, %v1707_v57 }
 0xe72   :  { %v1710_v59 = vmax.f32 %v1708_v58, 0.0 }
 0xe74   :  { %1850 = vmatmul.msk.f32.vlgmr.msra.gmra.mxu2 %vm749_vm3, %v1710_v59 }
 0xef7   :  { %v1743_v61 = vpop.f32.mrf.mxu2 }
 0xef8   :  { %v1744_v62 = vadd.f32 %v1957_v60, %v1743_v61 }
 0xefa   :  { %1747 = vst.msk [vmem:[%s3215_s5] sm:$0xff] %vm1746_vm11, %v1744_v62 }
 0xefb   :  { %1752 = vsyncpa [#allocation3], 1 }
 0xefc   :  { %1753 = vsyncpa [#allocation5], 1 }
 0xefd   :  { %1754 = vsyncpa [#allocation8], 1 }
 0xefe   :  { %1755 = vsyncpa [#allocation11], 1 }
 0xeff   :  { %1756 = vsyncpa [#allocation14], 1 }
 0xf00   :  { %1757 = vsyncpa [#allocation17], 1 }
 0xf01   :  { %1758 = vsyncpa [#allocation20], 1 }
 0xf02   :  { %1759 = vsyncpa [#allocation23], 1 }
 0xf03   :  { %1760 = vsyncpa [#allocation26], 1 }
 0xf04   :  { %1761 = vsyncpa [#allocation29], 1 }
 0xf05   :  { %1762 = vsyncpa [#allocation32], 1 }
 0xf06   :  { %1763 = vsyncpa [#allocation35], 1 }
 0xf07   :  { %1764 = vsyncpa [#allocation38], 1 }
 0xf08   :  { %1765 = vsyncpa [#allocation41], 1 }
 0xf09   :  { %1766 = vsyncpa [#allocation44], 1 }
 0xf0a   :  { %1767 = vsyncpa [#allocation47], 1 }
 0xf0b   :  { %1768 = vsyncpa [#allocation50], 1 }
 0xf0c   :  { %1769 = vsyncpa [#allocation53], 1 }

</bundles_post_ra>
